<compile_context>
chip_gen: v7x
topology: tpu7x:2x2x1
jax: 0.10.0
libtpu: 0.0.40
codegen_flags: <defaults>
</compile_context>

<pallas_src>
import jax
import jax.numpy as jnp
from jax.experimental import pallas as pl
from jax.experimental.pallas import tpu as pltpu


# ---------------------------------------------------------------------------
# Pallas kernel: fused (depthwise 3x3 over reflect-padded input) + (1x1 conv) + bias
# ---------------------------------------------------------------------------
def _ddc_kernel(xp_ref, wd_ref, wp_ref, b_ref, out_ref):
    # xp_ref : (C, H+2, W+2)  VMEM  reflect-padded input planes for one batch item
    # wd_ref : (C*K, 9)       SMEM  fused depthwise weights, tap index t = kh*3 + kw
    # wp_ref : (OC, C*K)      SMEM  1x1 pointwise conv weights
    # b_ref  : (OC,)          SMEM  folded output bias (wp @ bd_fused + bp)
    # out_ref: (OC, H, W)     VMEM
    C = xp_ref.shape[0]
    CK = wd_ref.shape[0]
    OC, H, W = out_ref.shape
    Kexp = CK // C  # depthwise output copies per input channel (groups=C)

    accs = [None] * OC  # pointwise accumulators, each (H, W) in f32 registers/VMEM
    for c in range(C):
        # 9 shifted (H, W) windows of this channel's reflect-padded plane,
        # sliced once and reused for all Kexp copies and all OC outputs.
        wins = [xp_ref[c, dy:dy + H, dx:dx + W]
                for dy in range(3) for dx in range(3)]
        for m in range(Kexp):
            o = c * Kexp + m  # depthwise output channel fed by input channel c
            feat = wd_ref[o, 0] * wins[0]
            for t in range(1, 9):
                feat = feat + wd_ref[o, t] * wins[t]
            # Immediately fold this feats-channel into the 1x1-conv accumulators,
            # so `feats` never materializes outside registers/VMEM.
            for oc in range(OC):
                term = wp_ref[oc, o] * feat
                accs[oc] = term if accs[oc] is None else accs[oc] + term

    for oc in range(OC):
        out_ref[oc] = (accs[oc] + b_ref[oc]).astype(out_ref.dtype)


# ---------------------------------------------------------------------------
# Wrapper
# ---------------------------------------------------------------------------
def dynamic_depthwise_convolution(x, dw_weight, dw_bias, mix_weight, pw_weight, pw_bias):
    """JAX/Pallas equivalent of DynamicDepthwiseConvolution.forward (NCHW).

    x         : (B, C, H, W)
    dw_weight : (num_cnvs, C*K, 1, 3, 3)  PyTorch grouped-conv weights (OIHW, groups=C)
    dw_bias   : (num_cnvs, C*K)
    mix_weight: (num_cnvs, 1)             module's `self.weights`
    pw_weight : (OC, C*K, 1, 1)           final 1x1 conv weights
    pw_bias   : (OC,)
    """
    B, C, H, W = x.shape
    num_cnvs, CK = dw_bias.shape
    OC = pw_bias.shape[0]

    # glue: exact linear fusion of the num_cnvs weighted depthwise convs (tiny params).
    mw = mix_weight.reshape(num_cnvs).astype(jnp.float32)
    wd = jnp.einsum('n,noihw->oihw', mw, dw_weight).reshape(CK, 9)   # (C*K, 9)
    bd = mw @ dw_bias                                                # (C*K,)
    wp = pw_weight.reshape(OC, CK)                                   # (OC, C*K)
    # glue: fold depthwise bias through the 1x1 conv into a single output bias.
    b_out = wp @ bd + pw_bias                                        # (OC,)

    # glue: 'same' reflect padding for k=3, stride=1 (matches padding_mode='reflect').
    xp = jnp.pad(x, ((0, 0), (0, 0), (1, 1), (1, 1)), mode='reflect')
    Hp, Wp = H + 2, W + 2

    smem = pl.BlockSpec(memory_space=pltpu.MemorySpace.SMEM)
    out = pl.pallas_call(
        _ddc_kernel,
        out_shape=jax.ShapeDtypeStruct((B, OC, H, W), x.dtype),
        grid=(B,),
        in_specs=[
            pl.BlockSpec((None, C, Hp, Wp), lambda b: (b, 0, 0, 0)),  # one image / step
            smem,  # wd  (C*K, 9)
            smem,  # wp  (OC, C*K)
            smem,  # b_out (OC,)
        ],
        out_specs=pl.BlockSpec((None, OC, H, W), lambda b: (b, 0, 0, 0)),
        compiler_params=pltpu.CompilerParams(dimension_semantics=("parallel",)),
    )(xp, wd, wp, b_out)
    return out


# ---------------------------------------------------------------------------
# Main
# ---------------------------------------------------------------------------
if __name__ == "__main__":
    key = jax.random.PRNGKey(0)
    kx, kw1, kb1, kmw, kw2, kb2 = jax.random.split(key, 6)

    B, C, H, W = 2, 4, 16, 16
    K, num_cnvs, OC = 2, 4, 8
    CK = C * K

    x = jax.random.normal(kx, (B, C, H, W), dtype=jnp.float32)
    dw_weight = jax.random.normal(kw1, (num_cnvs, CK, 1, 3, 3), dtype=jnp.float32) * 0.2
    dw_bias = jax.random.normal(kb1, (num_cnvs, CK), dtype=jnp.float32) * 0.1
    mix_weight = (jnp.full((num_cnvs, 1), 1.0 / num_cnvs, dtype=jnp.float32)
                  + 0.05 * jax.random.normal(kmw, (num_cnvs, 1), dtype=jnp.float32))
    pw_weight = jax.random.normal(kw2, (OC, CK, 1, 1), dtype=jnp.float32) * 0.2
    pw_bias = jax.random.normal(kb2, (OC,), dtype=jnp.float32) * 0.1

    out = jax.block_until_ready(
        dynamic_depthwise_convolution(x, dw_weight, dw_bias, mix_weight, pw_weight, pw_bias))

    # Pure-JAX reference mirroring the PyTorch forward literally.
    xp = jnp.pad(x, ((0, 0), (0, 0), (1, 1), (1, 1)), mode='reflect')
    feats = jnp.zeros((B, CK, H, W), jnp.float32)
    for i in range(num_cnvs):
        ci = jax.lax.conv_general_dilated(
            xp, dw_weight[i], window_strides=(1, 1), padding='VALID',
            dimension_numbers=("NCHW", "OIHW", "NCHW"),
            feature_group_count=C) + dw_bias[i][None, :, None, None]
        feats = feats + mix_weight[i, 0] * ci
    ref = jax.lax.conv_general_dilated(
        feats, pw_weight, window_strides=(1, 1), padding='VALID',
        dimension_numbers=("NCHW", "OIHW", "NCHW")) + pw_bias[None, :, None, None]

    assert out.shape == (B, OC, H, W)
    assert jnp.allclose(out, ref, atol=1e-4, rtol=1e-4), float(jnp.max(jnp.abs(out - ref)))
    print("KERNEL_OK")
</pallas_src>

<mosaic_0001>
module attributes {stable_mosaic.version = 11 : i64} {
  func.func @_ddc_kernel(%arg0: i32, %arg1: memref<1x4x18x18xf32, #tpu.memory_space<vmem>>, %arg2: memref<8x9xf32, #tpu.memory_space<smem>>, %arg3: memref<8x8xf32, #tpu.memory_space<smem>>, %arg4: memref<8xf32, #tpu.memory_space<smem>>, %arg5: memref<1x8x16x16xf32, #tpu.memory_space<vmem>>) attributes {dimension_semantics = [#tpu.dimension_semantics<parallel>], iteration_bounds = array<i64: 2>, scalar_prefetch = 0 : i64, scratch_operands = 0 : i64, tpu.core_type = #tpu.core_type<tc>, window_params = [{transform_indices = @transform_0, window_bounds = array<i64: 1, 4, 18, 18>}, {transform_indices = @transform_1, window_bounds = array<i64: 8, 9>}, {transform_indices = @transform_2, window_bounds = array<i64: 8, 8>}, {transform_indices = @transform_3, window_bounds = array<i64: 8>}, {transform_indices = @transform_4, window_bounds = array<i64: 1, 8, 16, 16>}]} {
    %c0 = arith.constant 0 : index
    %c0_0 = arith.constant 0 : index
    %c0_1 = arith.constant 0 : index
    %c0_2 = arith.constant 0 : index
    %0 = vector.load %arg1[%c0, %c0_0, %c0_1, %c0_2] : memref<1x4x18x18xf32, #tpu.memory_space<vmem>>, vector<1x1x16x16xf32>
    %1 = vector.shape_cast %0 : vector<1x1x16x16xf32> to vector<16x16xf32>
    %c0_3 = arith.constant 0 : index
    %c0_4 = arith.constant 0 : index
    %c0_5 = arith.constant 0 : index
    %c1 = arith.constant 1 : index
    %2 = vector.load %arg1[%c0_3, %c0_4, %c0_5, %c1] : memref<1x4x18x18xf32, #tpu.memory_space<vmem>>, vector<1x1x16x16xf32>
    %3 = vector.shape_cast %2 : vector<1x1x16x16xf32> to vector<16x16xf32>
    %c0_6 = arith.constant 0 : index
    %c0_7 = arith.constant 0 : index
    %c0_8 = arith.constant 0 : index
    %c2 = arith.constant 2 : index
    %4 = vector.load %arg1[%c0_6, %c0_7, %c0_8, %c2] : memref<1x4x18x18xf32, #tpu.memory_space<vmem>>, vector<1x1x16x16xf32>
    %5 = vector.shape_cast %4 : vector<1x1x16x16xf32> to vector<16x16xf32>
    %c0_9 = arith.constant 0 : index
    %c0_10 = arith.constant 0 : index
    %c1_11 = arith.constant 1 : index
    %c0_12 = arith.constant 0 : index
    %6 = vector.load %arg1[%c0_9, %c0_10, %c1_11, %c0_12] : memref<1x4x18x18xf32, #tpu.memory_space<vmem>>, vector<1x1x16x16xf32>
    %7 = vector.shape_cast %6 : vector<1x1x16x16xf32> to vector<16x16xf32>
    %c0_13 = arith.constant 0 : index
    %c0_14 = arith.constant 0 : index
    %c1_15 = arith.constant 1 : index
    %c1_16 = arith.constant 1 : index
    %8 = vector.load %arg1[%c0_13, %c0_14, %c1_15, %c1_16] : memref<1x4x18x18xf32, #tpu.memory_space<vmem>>, vector<1x1x16x16xf32>
    %9 = vector.shape_cast %8 : vector<1x1x16x16xf32> to vector<16x16xf32>
    %c0_17 = arith.constant 0 : index
    %c0_18 = arith.constant 0 : index
    %c1_19 = arith.constant 1 : index
    %c2_20 = arith.constant 2 : index
    %10 = vector.load %arg1[%c0_17, %c0_18, %c1_19, %c2_20] : memref<1x4x18x18xf32, #tpu.memory_space<vmem>>, vector<1x1x16x16xf32>
    %11 = vector.shape_cast %10 : vector<1x1x16x16xf32> to vector<16x16xf32>
    %c0_21 = arith.constant 0 : index
    %c0_22 = arith.constant 0 : index
    %c2_23 = arith.constant 2 : index
    %c0_24 = arith.constant 0 : index
    %12 = vector.load %arg1[%c0_21, %c0_22, %c2_23, %c0_24] : memref<1x4x18x18xf32, #tpu.memory_space<vmem>>, vector<1x1x16x16xf32>
    %13 = vector.shape_cast %12 : vector<1x1x16x16xf32> to vector<16x16xf32>
    %c0_25 = arith.constant 0 : index
    %c0_26 = arith.constant 0 : index
    %c2_27 = arith.constant 2 : index
    %c1_28 = arith.constant 1 : index
    %14 = vector.load %arg1[%c0_25, %c0_26, %c2_27, %c1_28] : memref<1x4x18x18xf32, #tpu.memory_space<vmem>>, vector<1x1x16x16xf32>
    %15 = vector.shape_cast %14 : vector<1x1x16x16xf32> to vector<16x16xf32>
    %c0_29 = arith.constant 0 : index
    %c0_30 = arith.constant 0 : index
    %c2_31 = arith.constant 2 : index
    %c2_32 = arith.constant 2 : index
    %16 = vector.load %arg1[%c0_29, %c0_30, %c2_31, %c2_32] : memref<1x4x18x18xf32, #tpu.memory_space<vmem>>, vector<1x1x16x16xf32>
    %17 = vector.shape_cast %16 : vector<1x1x16x16xf32> to vector<16x16xf32>
    %c0_33 = arith.constant 0 : index
    %c0_34 = arith.constant 0 : index
    %18 = memref.load %arg2[%c0_33, %c0_34] : memref<8x9xf32, #tpu.memory_space<smem>>
    %19 = vector.broadcast %18 : f32 to vector<16x16xf32>
    %20 = arith.mulf %19, %1 : vector<16x16xf32>
    %c0_35 = arith.constant 0 : index
    %c1_36 = arith.constant 1 : index
    %21 = memref.load %arg2[%c0_35, %c1_36] : memref<8x9xf32, #tpu.memory_space<smem>>
    %22 = vector.broadcast %21 : f32 to vector<16x16xf32>
    %23 = arith.mulf %22, %3 : vector<16x16xf32>
    %24 = arith.addf %20, %23 : vector<16x16xf32>
    %c0_37 = arith.constant 0 : index
    %c2_38 = arith.constant 2 : index
    %25 = memref.load %arg2[%c0_37, %c2_38] : memref<8x9xf32, #tpu.memory_space<smem>>
    %26 = vector.broadcast %25 : f32 to vector<16x16xf32>
    %27 = arith.mulf %26, %5 : vector<16x16xf32>
    %28 = arith.addf %24, %27 : vector<16x16xf32>
    %c0_39 = arith.constant 0 : index
    %c3 = arith.constant 3 : index
    %29 = memref.load %arg2[%c0_39, %c3] : memref<8x9xf32, #tpu.memory_space<smem>>
    %30 = vector.broadcast %29 : f32 to vector<16x16xf32>
    %31 = arith.mulf %30, %7 : vector<16x16xf32>
    %32 = arith.addf %28, %31 : vector<16x16xf32>
    %c0_40 = arith.constant 0 : index
    %c4 = arith.constant 4 : index
    %33 = memref.load %arg2[%c0_40, %c4] : memref<8x9xf32, #tpu.memory_space<smem>>
    %34 = vector.broadcast %33 : f32 to vector<16x16xf32>
    %35 = arith.mulf %34, %9 : vector<16x16xf32>
    %36 = arith.addf %32, %35 : vector<16x16xf32>
    %c0_41 = arith.constant 0 : index
    %c5 = arith.constant 5 : index
    %37 = memref.load %arg2[%c0_41, %c5] : memref<8x9xf32, #tpu.memory_space<smem>>
    %38 = vector.broadcast %37 : f32 to vector<16x16xf32>
    %39 = arith.mulf %38, %11 : vector<16x16xf32>
    %40 = arith.addf %36, %39 : vector<16x16xf32>
    %c0_42 = arith.constant 0 : index
    %c6 = arith.constant 6 : index
    %41 = memref.load %arg2[%c0_42, %c6] : memref<8x9xf32, #tpu.memory_space<smem>>
    %42 = vector.broadcast %41 : f32 to vector<16x16xf32>
    %43 = arith.mulf %42, %13 : vector<16x16xf32>
    %44 = arith.addf %40, %43 : vector<16x16xf32>
    %c0_43 = arith.constant 0 : index
    %c7 = arith.constant 7 : index
    %45 = memref.load %arg2[%c0_43, %c7] : memref<8x9xf32, #tpu.memory_space<smem>>
    %46 = vector.broadcast %45 : f32 to vector<16x16xf32>
    %47 = arith.mulf %46, %15 : vector<16x16xf32>
    %48 = arith.addf %44, %47 : vector<16x16xf32>
    %c0_44 = arith.constant 0 : index
    %c8 = arith.constant 8 : index
    %49 = memref.load %arg2[%c0_44, %c8] : memref<8x9xf32, #tpu.memory_space<smem>>
    %50 = vector.broadcast %49 : f32 to vector<16x16xf32>
    %51 = arith.mulf %50, %17 : vector<16x16xf32>
    %52 = arith.addf %48, %51 : vector<16x16xf32>
    %c0_45 = arith.constant 0 : index
    %c0_46 = arith.constant 0 : index
    %53 = memref.load %arg3[%c0_45, %c0_46] : memref<8x8xf32, #tpu.memory_space<smem>>
    %54 = vector.broadcast %53 : f32 to vector<16x16xf32>
    %55 = arith.mulf %54, %52 : vector<16x16xf32>
    %c1_47 = arith.constant 1 : index
    %c0_48 = arith.constant 0 : index
    %56 = memref.load %arg3[%c1_47, %c0_48] : memref<8x8xf32, #tpu.memory_space<smem>>
    %57 = vector.broadcast %56 : f32 to vector<16x16xf32>
    %58 = arith.mulf %57, %52 : vector<16x16xf32>
    %c2_49 = arith.constant 2 : index
    %c0_50 = arith.constant 0 : index
    %59 = memref.load %arg3[%c2_49, %c0_50] : memref<8x8xf32, #tpu.memory_space<smem>>
    %60 = vector.broadcast %59 : f32 to vector<16x16xf32>
    %61 = arith.mulf %60, %52 : vector<16x16xf32>
    %c3_51 = arith.constant 3 : index
    %c0_52 = arith.constant 0 : index
    %62 = memref.load %arg3[%c3_51, %c0_52] : memref<8x8xf32, #tpu.memory_space<smem>>
    %63 = vector.broadcast %62 : f32 to vector<16x16xf32>
    %64 = arith.mulf %63, %52 : vector<16x16xf32>
    %c4_53 = arith.constant 4 : index
    %c0_54 = arith.constant 0 : index
    %65 = memref.load %arg3[%c4_53, %c0_54] : memref<8x8xf32, #tpu.memory_space<smem>>
    %66 = vector.broadcast %65 : f32 to vector<16x16xf32>
    %67 = arith.mulf %66, %52 : vector<16x16xf32>
    %c5_55 = arith.constant 5 : index
    %c0_56 = arith.constant 0 : index
    %68 = memref.load %arg3[%c5_55, %c0_56] : memref<8x8xf32, #tpu.memory_space<smem>>
    %69 = vector.broadcast %68 : f32 to vector<16x16xf32>
    %70 = arith.mulf %69, %52 : vector<16x16xf32>
    %c6_57 = arith.constant 6 : index
    %c0_58 = arith.constant 0 : index
    %71 = memref.load %arg3[%c6_57, %c0_58] : memref<8x8xf32, #tpu.memory_space<smem>>
    %72 = vector.broadcast %71 : f32 to vector<16x16xf32>
    %73 = arith.mulf %72, %52 : vector<16x16xf32>
    %c7_59 = arith.constant 7 : index
    %c0_60 = arith.constant 0 : index
    %74 = memref.load %arg3[%c7_59, %c0_60] : memref<8x8xf32, #tpu.memory_space<smem>>
    %75 = vector.broadcast %74 : f32 to vector<16x16xf32>
    %76 = arith.mulf %75, %52 : vector<16x16xf32>
    %c1_61 = arith.constant 1 : index
    %c0_62 = arith.constant 0 : index
    %77 = memref.load %arg2[%c1_61, %c0_62] : memref<8x9xf32, #tpu.memory_space<smem>>
    %78 = vector.broadcast %77 : f32 to vector<16x16xf32>
    %79 = arith.mulf %78, %1 : vector<16x16xf32>
    %c1_63 = arith.constant 1 : index
    %c1_64 = arith.constant 1 : index
    %80 = memref.load %arg2[%c1_63, %c1_64] : memref<8x9xf32, #tpu.memory_space<smem>>
    %81 = vector.broadcast %80 : f32 to vector<16x16xf32>
    %82 = arith.mulf %81, %3 : vector<16x16xf32>
    %83 = arith.addf %79, %82 : vector<16x16xf32>
    %c1_65 = arith.constant 1 : index
    %c2_66 = arith.constant 2 : index
    %84 = memref.load %arg2[%c1_65, %c2_66] : memref<8x9xf32, #tpu.memory_space<smem>>
    %85 = vector.broadcast %84 : f32 to vector<16x16xf32>
    %86 = arith.mulf %85, %5 : vector<16x16xf32>
    %87 = arith.addf %83, %86 : vector<16x16xf32>
    %c1_67 = arith.constant 1 : index
    %c3_68 = arith.constant 3 : index
    %88 = memref.load %arg2[%c1_67, %c3_68] : memref<8x9xf32, #tpu.memory_space<smem>>
    %89 = vector.broadcast %88 : f32 to vector<16x16xf32>
    %90 = arith.mulf %89, %7 : vector<16x16xf32>
    %91 = arith.addf %87, %90 : vector<16x16xf32>
    %c1_69 = arith.constant 1 : index
    %c4_70 = arith.constant 4 : index
    %92 = memref.load %arg2[%c1_69, %c4_70] : memref<8x9xf32, #tpu.memory_space<smem>>
    %93 = vector.broadcast %92 : f32 to vector<16x16xf32>
    %94 = arith.mulf %93, %9 : vector<16x16xf32>
    %95 = arith.addf %91, %94 : vector<16x16xf32>
    %c1_71 = arith.constant 1 : index
    %c5_72 = arith.constant 5 : index
    %96 = memref.load %arg2[%c1_71, %c5_72] : memref<8x9xf32, #tpu.memory_space<smem>>
    %97 = vector.broadcast %96 : f32 to vector<16x16xf32>
    %98 = arith.mulf %97, %11 : vector<16x16xf32>
    %99 = arith.addf %95, %98 : vector<16x16xf32>
    %c1_73 = arith.constant 1 : index
    %c6_74 = arith.constant 6 : index
    %100 = memref.load %arg2[%c1_73, %c6_74] : memref<8x9xf32, #tpu.memory_space<smem>>
    %101 = vector.broadcast %100 : f32 to vector<16x16xf32>
    %102 = arith.mulf %101, %13 : vector<16x16xf32>
    %103 = arith.addf %99, %102 : vector<16x16xf32>
    %c1_75 = arith.constant 1 : index
    %c7_76 = arith.constant 7 : index
    %104 = memref.load %arg2[%c1_75, %c7_76] : memref<8x9xf32, #tpu.memory_space<smem>>
    %105 = vector.broadcast %104 : f32 to vector<16x16xf32>
    %106 = arith.mulf %105, %15 : vector<16x16xf32>
    %107 = arith.addf %103, %106 : vector<16x16xf32>
    %c1_77 = arith.constant 1 : index
    %c8_78 = arith.constant 8 : index
    %108 = memref.load %arg2[%c1_77, %c8_78] : memref<8x9xf32, #tpu.memory_space<smem>>
    %109 = vector.broadcast %108 : f32 to vector<16x16xf32>
    %110 = arith.mulf %109, %17 : vector<16x16xf32>
    %111 = arith.addf %107, %110 : vector<16x16xf32>
    %c0_79 = arith.constant 0 : index
    %c1_80 = arith.constant 1 : index
    %112 = memref.load %arg3[%c0_79, %c1_80] : memref<8x8xf32, #tpu.memory_space<smem>>
    %113 = vector.broadcast %112 : f32 to vector<16x16xf32>
    %114 = arith.mulf %113, %111 : vector<16x16xf32>
    %115 = arith.addf %55, %114 : vector<16x16xf32>
    %c1_81 = arith.constant 1 : index
    %c1_82 = arith.constant 1 : index
    %116 = memref.load %arg3[%c1_81, %c1_82] : memref<8x8xf32, #tpu.memory_space<smem>>
    %117 = vector.broadcast %116 : f32 to vector<16x16xf32>
    %118 = arith.mulf %117, %111 : vector<16x16xf32>
    %119 = arith.addf %58, %118 : vector<16x16xf32>
    %c2_83 = arith.constant 2 : index
    %c1_84 = arith.constant 1 : index
    %120 = memref.load %arg3[%c2_83, %c1_84] : memref<8x8xf32, #tpu.memory_space<smem>>
    %121 = vector.broadcast %120 : f32 to vector<16x16xf32>
    %122 = arith.mulf %121, %111 : vector<16x16xf32>
    %123 = arith.addf %61, %122 : vector<16x16xf32>
    %c3_85 = arith.constant 3 : index
    %c1_86 = arith.constant 1 : index
    %124 = memref.load %arg3[%c3_85, %c1_86] : memref<8x8xf32, #tpu.memory_space<smem>>
    %125 = vector.broadcast %124 : f32 to vector<16x16xf32>
    %126 = arith.mulf %125, %111 : vector<16x16xf32>
    %127 = arith.addf %64, %126 : vector<16x16xf32>
    %c4_87 = arith.constant 4 : index
    %c1_88 = arith.constant 1 : index
    %128 = memref.load %arg3[%c4_87, %c1_88] : memref<8x8xf32, #tpu.memory_space<smem>>
    %129 = vector.broadcast %128 : f32 to vector<16x16xf32>
    %130 = arith.mulf %129, %111 : vector<16x16xf32>
    %131 = arith.addf %67, %130 : vector<16x16xf32>
    %c5_89 = arith.constant 5 : index
    %c1_90 = arith.constant 1 : index
    %132 = memref.load %arg3[%c5_89, %c1_90] : memref<8x8xf32, #tpu.memory_space<smem>>
    %133 = vector.broadcast %132 : f32 to vector<16x16xf32>
    %134 = arith.mulf %133, %111 : vector<16x16xf32>
    %135 = arith.addf %70, %134 : vector<16x16xf32>
    %c6_91 = arith.constant 6 : index
    %c1_92 = arith.constant 1 : index
    %136 = memref.load %arg3[%c6_91, %c1_92] : memref<8x8xf32, #tpu.memory_space<smem>>
    %137 = vector.broadcast %136 : f32 to vector<16x16xf32>
    %138 = arith.mulf %137, %111 : vector<16x16xf32>
    %139 = arith.addf %73, %138 : vector<16x16xf32>
    %c7_93 = arith.constant 7 : index
    %c1_94 = arith.constant 1 : index
    %140 = memref.load %arg3[%c7_93, %c1_94] : memref<8x8xf32, #tpu.memory_space<smem>>
    %141 = vector.broadcast %140 : f32 to vector<16x16xf32>
    %142 = arith.mulf %141, %111 : vector<16x16xf32>
    %143 = arith.addf %76, %142 : vector<16x16xf32>
    %c0_95 = arith.constant 0 : index
    %c1_96 = arith.constant 1 : index
    %c0_97 = arith.constant 0 : index
    %c0_98 = arith.constant 0 : index
    %144 = vector.load %arg1[%c0_95, %c1_96, %c0_97, %c0_98] : memref<1x4x18x18xf32, #tpu.memory_space<vmem>>, vector<1x1x16x16xf32>
    %145 = vector.shape_cast %144 : vector<1x1x16x16xf32> to vector<16x16xf32>
    %c0_99 = arith.constant 0 : index
    %c1_100 = arith.constant 1 : index
    %c0_101 = arith.constant 0 : index
    %c1_102 = arith.constant 1 : index
    %146 = vector.load %arg1[%c0_99, %c1_100, %c0_101, %c1_102] : memref<1x4x18x18xf32, #tpu.memory_space<vmem>>, vector<1x1x16x16xf32>
    %147 = vector.shape_cast %146 : vector<1x1x16x16xf32> to vector<16x16xf32>
    %c0_103 = arith.constant 0 : index
    %c1_104 = arith.constant 1 : index
    %c0_105 = arith.constant 0 : index
    %c2_106 = arith.constant 2 : index
    %148 = vector.load %arg1[%c0_103, %c1_104, %c0_105, %c2_106] : memref<1x4x18x18xf32, #tpu.memory_space<vmem>>, vector<1x1x16x16xf32>
    %149 = vector.shape_cast %148 : vector<1x1x16x16xf32> to vector<16x16xf32>
    %c0_107 = arith.constant 0 : index
    %c1_108 = arith.constant 1 : index
    %c1_109 = arith.constant 1 : index
    %c0_110 = arith.constant 0 : index
    %150 = vector.load %arg1[%c0_107, %c1_108, %c1_109, %c0_110] : memref<1x4x18x18xf32, #tpu.memory_space<vmem>>, vector<1x1x16x16xf32>
    %151 = vector.shape_cast %150 : vector<1x1x16x16xf32> to vector<16x16xf32>
    %c0_111 = arith.constant 0 : index
    %c1_112 = arith.constant 1 : index
    %c1_113 = arith.constant 1 : index
    %c1_114 = arith.constant 1 : index
    %152 = vector.load %arg1[%c0_111, %c1_112, %c1_113, %c1_114] : memref<1x4x18x18xf32, #tpu.memory_space<vmem>>, vector<1x1x16x16xf32>
    %153 = vector.shape_cast %152 : vector<1x1x16x16xf32> to vector<16x16xf32>
    %c0_115 = arith.constant 0 : index
    %c1_116 = arith.constant 1 : index
    %c1_117 = arith.constant 1 : index
    %c2_118 = arith.constant 2 : index
    %154 = vector.load %arg1[%c0_115, %c1_116, %c1_117, %c2_118] : memref<1x4x18x18xf32, #tpu.memory_space<vmem>>, vector<1x1x16x16xf32>
    %155 = vector.shape_cast %154 : vector<1x1x16x16xf32> to vector<16x16xf32>
    %c0_119 = arith.constant 0 : index
    %c1_120 = arith.constant 1 : index
    %c2_121 = arith.constant 2 : index
    %c0_122 = arith.constant 0 : index
    %156 = vector.load %arg1[%c0_119, %c1_120, %c2_121, %c0_122] : memref<1x4x18x18xf32, #tpu.memory_space<vmem>>, vector<1x1x16x16xf32>
    %157 = vector.shape_cast %156 : vector<1x1x16x16xf32> to vector<16x16xf32>
    %c0_123 = arith.constant 0 : index
    %c1_124 = arith.constant 1 : index
    %c2_125 = arith.constant 2 : index
    %c1_126 = arith.constant 1 : index
    %158 = vector.load %arg1[%c0_123, %c1_124, %c2_125, %c1_126] : memref<1x4x18x18xf32, #tpu.memory_space<vmem>>, vector<1x1x16x16xf32>
    %159 = vector.shape_cast %158 : vector<1x1x16x16xf32> to vector<16x16xf32>
    %c0_127 = arith.constant 0 : index
    %c1_128 = arith.constant 1 : index
    %c2_129 = arith.constant 2 : index
    %c2_130 = arith.constant 2 : index
    %160 = vector.load %arg1[%c0_127, %c1_128, %c2_129, %c2_130] : memref<1x4x18x18xf32, #tpu.memory_space<vmem>>, vector<1x1x16x16xf32>
    %161 = vector.shape_cast %160 : vector<1x1x16x16xf32> to vector<16x16xf32>
    %c2_131 = arith.constant 2 : index
    %c0_132 = arith.constant 0 : index
    %162 = memref.load %arg2[%c2_131, %c0_132] : memref<8x9xf32, #tpu.memory_space<smem>>
    %163 = vector.broadcast %162 : f32 to vector<16x16xf32>
    %164 = arith.mulf %163, %145 : vector<16x16xf32>
    %c2_133 = arith.constant 2 : index
    %c1_134 = arith.constant 1 : index
    %165 = memref.load %arg2[%c2_133, %c1_134] : memref<8x9xf32, #tpu.memory_space<smem>>
    %166 = vector.broadcast %165 : f32 to vector<16x16xf32>
    %167 = arith.mulf %166, %147 : vector<16x16xf32>
    %168 = arith.addf %164, %167 : vector<16x16xf32>
    %c2_135 = arith.constant 2 : index
    %c2_136 = arith.constant 2 : index
    %169 = memref.load %arg2[%c2_135, %c2_136] : memref<8x9xf32, #tpu.memory_space<smem>>
    %170 = vector.broadcast %169 : f32 to vector<16x16xf32>
    %171 = arith.mulf %170, %149 : vector<16x16xf32>
    %172 = arith.addf %168, %171 : vector<16x16xf32>
    %c2_137 = arith.constant 2 : index
    %c3_138 = arith.constant 3 : index
    %173 = memref.load %arg2[%c2_137, %c3_138] : memref<8x9xf32, #tpu.memory_space<smem>>
    %174 = vector.broadcast %173 : f32 to vector<16x16xf32>
    %175 = arith.mulf %174, %151 : vector<16x16xf32>
    %176 = arith.addf %172, %175 : vector<16x16xf32>
    %c2_139 = arith.constant 2 : index
    %c4_140 = arith.constant 4 : index
    %177 = memref.load %arg2[%c2_139, %c4_140] : memref<8x9xf32, #tpu.memory_space<smem>>
    %178 = vector.broadcast %177 : f32 to vector<16x16xf32>
    %179 = arith.mulf %178, %153 : vector<16x16xf32>
    %180 = arith.addf %176, %179 : vector<16x16xf32>
    %c2_141 = arith.constant 2 : index
    %c5_142 = arith.constant 5 : index
    %181 = memref.load %arg2[%c2_141, %c5_142] : memref<8x9xf32, #tpu.memory_space<smem>>
    %182 = vector.broadcast %181 : f32 to vector<16x16xf32>
    %183 = arith.mulf %182, %155 : vector<16x16xf32>
    %184 = arith.addf %180, %183 : vector<16x16xf32>
    %c2_143 = arith.constant 2 : index
    %c6_144 = arith.constant 6 : index
    %185 = memref.load %arg2[%c2_143, %c6_144] : memref<8x9xf32, #tpu.memory_space<smem>>
    %186 = vector.broadcast %185 : f32 to vector<16x16xf32>
    %187 = arith.mulf %186, %157 : vector<16x16xf32>
    %188 = arith.addf %184, %187 : vector<16x16xf32>
    %c2_145 = arith.constant 2 : index
    %c7_146 = arith.constant 7 : index
    %189 = memref.load %arg2[%c2_145, %c7_146] : memref<8x9xf32, #tpu.memory_space<smem>>
    %190 = vector.broadcast %189 : f32 to vector<16x16xf32>
    %191 = arith.mulf %190, %159 : vector<16x16xf32>
    %192 = arith.addf %188, %191 : vector<16x16xf32>
    %c2_147 = arith.constant 2 : index
    %c8_148 = arith.constant 8 : index
    %193 = memref.load %arg2[%c2_147, %c8_148] : memref<8x9xf32, #tpu.memory_space<smem>>
    %194 = vector.broadcast %193 : f32 to vector<16x16xf32>
    %195 = arith.mulf %194, %161 : vector<16x16xf32>
    %196 = arith.addf %192, %195 : vector<16x16xf32>
    %c0_149 = arith.constant 0 : index
    %c2_150 = arith.constant 2 : index
    %197 = memref.load %arg3[%c0_149, %c2_150] : memref<8x8xf32, #tpu.memory_space<smem>>
    %198 = vector.broadcast %197 : f32 to vector<16x16xf32>
    %199 = arith.mulf %198, %196 : vector<16x16xf32>
    %200 = arith.addf %115, %199 : vector<16x16xf32>
    %c1_151 = arith.constant 1 : index
    %c2_152 = arith.constant 2 : index
    %201 = memref.load %arg3[%c1_151, %c2_152] : memref<8x8xf32, #tpu.memory_space<smem>>
    %202 = vector.broadcast %201 : f32 to vector<16x16xf32>
    %203 = arith.mulf %202, %196 : vector<16x16xf32>
    %204 = arith.addf %119, %203 : vector<16x16xf32>
    %c2_153 = arith.constant 2 : index
    %c2_154 = arith.constant 2 : index
    %205 = memref.load %arg3[%c2_153, %c2_154] : memref<8x8xf32, #tpu.memory_space<smem>>
    %206 = vector.broadcast %205 : f32 to vector<16x16xf32>
    %207 = arith.mulf %206, %196 : vector<16x16xf32>
    %208 = arith.addf %123, %207 : vector<16x16xf32>
    %c3_155 = arith.constant 3 : index
    %c2_156 = arith.constant 2 : index
    %209 = memref.load %arg3[%c3_155, %c2_156] : memref<8x8xf32, #tpu.memory_space<smem>>
    %210 = vector.broadcast %209 : f32 to vector<16x16xf32>
    %211 = arith.mulf %210, %196 : vector<16x16xf32>
    %212 = arith.addf %127, %211 : vector<16x16xf32>
    %c4_157 = arith.constant 4 : index
    %c2_158 = arith.constant 2 : index
    %213 = memref.load %arg3[%c4_157, %c2_158] : memref<8x8xf32, #tpu.memory_space<smem>>
    %214 = vector.broadcast %213 : f32 to vector<16x16xf32>
    %215 = arith.mulf %214, %196 : vector<16x16xf32>
    %216 = arith.addf %131, %215 : vector<16x16xf32>
    %c5_159 = arith.constant 5 : index
    %c2_160 = arith.constant 2 : index
    %217 = memref.load %arg3[%c5_159, %c2_160] : memref<8x8xf32, #tpu.memory_space<smem>>
    %218 = vector.broadcast %217 : f32 to vector<16x16xf32>
    %219 = arith.mulf %218, %196 : vector<16x16xf32>
    %220 = arith.addf %135, %219 : vector<16x16xf32>
    %c6_161 = arith.constant 6 : index
    %c2_162 = arith.constant 2 : index
    %221 = memref.load %arg3[%c6_161, %c2_162] : memref<8x8xf32, #tpu.memory_space<smem>>
    %222 = vector.broadcast %221 : f32 to vector<16x16xf32>
    %223 = arith.mulf %222, %196 : vector<16x16xf32>
    %224 = arith.addf %139, %223 : vector<16x16xf32>
    %c7_163 = arith.constant 7 : index
    %c2_164 = arith.constant 2 : index
    %225 = memref.load %arg3[%c7_163, %c2_164] : memref<8x8xf32, #tpu.memory_space<smem>>
    %226 = vector.broadcast %225 : f32 to vector<16x16xf32>
    %227 = arith.mulf %226, %196 : vector<16x16xf32>
    %228 = arith.addf %143, %227 : vector<16x16xf32>
    %c3_165 = arith.constant 3 : index
    %c0_166 = arith.constant 0 : index
    %229 = memref.load %arg2[%c3_165, %c0_166] : memref<8x9xf32, #tpu.memory_space<smem>>
    %230 = vector.broadcast %229 : f32 to vector<16x16xf32>
    %231 = arith.mulf %230, %145 : vector<16x16xf32>
    %c3_167 = arith.constant 3 : index
    %c1_168 = arith.constant 1 : index
    %232 = memref.load %arg2[%c3_167, %c1_168] : memref<8x9xf32, #tpu.memory_space<smem>>
    %233 = vector.broadcast %232 : f32 to vector<16x16xf32>
    %234 = arith.mulf %233, %147 : vector<16x16xf32>
    %235 = arith.addf %231, %234 : vector<16x16xf32>
    %c3_169 = arith.constant 3 : index
    %c2_170 = arith.constant 2 : index
    %236 = memref.load %arg2[%c3_169, %c2_170] : memref<8x9xf32, #tpu.memory_space<smem>>
    %237 = vector.broadcast %236 : f32 to vector<16x16xf32>
    %238 = arith.mulf %237, %149 : vector<16x16xf32>
    %239 = arith.addf %235, %238 : vector<16x16xf32>
    %c3_171 = arith.constant 3 : index
    %c3_172 = arith.constant 3 : index
    %240 = memref.load %arg2[%c3_171, %c3_172] : memref<8x9xf32, #tpu.memory_space<smem>>
    %241 = vector.broadcast %240 : f32 to vector<16x16xf32>
    %242 = arith.mulf %241, %151 : vector<16x16xf32>
    %243 = arith.addf %239, %242 : vector<16x16xf32>
    %c3_173 = arith.constant 3 : index
    %c4_174 = arith.constant 4 : index
    %244 = memref.load %arg2[%c3_173, %c4_174] : memref<8x9xf32, #tpu.memory_space<smem>>
    %245 = vector.broadcast %244 : f32 to vector<16x16xf32>
    %246 = arith.mulf %245, %153 : vector<16x16xf32>
    %247 = arith.addf %243, %246 : vector<16x16xf32>
    %c3_175 = arith.constant 3 : index
    %c5_176 = arith.constant 5 : index
    %248 = memref.load %arg2[%c3_175, %c5_176] : memref<8x9xf32, #tpu.memory_space<smem>>
    %249 = vector.broadcast %248 : f32 to vector<16x16xf32>
    %250 = arith.mulf %249, %155 : vector<16x16xf32>
    %251 = arith.addf %247, %250 : vector<16x16xf32>
    %c3_177 = arith.constant 3 : index
    %c6_178 = arith.constant 6 : index
    %252 = memref.load %arg2[%c3_177, %c6_178] : memref<8x9xf32, #tpu.memory_space<smem>>
    %253 = vector.broadcast %252 : f32 to vector<16x16xf32>
    %254 = arith.mulf %253, %157 : vector<16x16xf32>
    %255 = arith.addf %251, %254 : vector<16x16xf32>
    %c3_179 = arith.constant 3 : index
    %c7_180 = arith.constant 7 : index
    %256 = memref.load %arg2[%c3_179, %c7_180] : memref<8x9xf32, #tpu.memory_space<smem>>
    %257 = vector.broadcast %256 : f32 to vector<16x16xf32>
    %258 = arith.mulf %257, %159 : vector<16x16xf32>
    %259 = arith.addf %255, %258 : vector<16x16xf32>
    %c3_181 = arith.constant 3 : index
    %c8_182 = arith.constant 8 : index
    %260 = memref.load %arg2[%c3_181, %c8_182] : memref<8x9xf32, #tpu.memory_space<smem>>
    %261 = vector.broadcast %260 : f32 to vector<16x16xf32>
    %262 = arith.mulf %261, %161 : vector<16x16xf32>
    %263 = arith.addf %259, %262 : vector<16x16xf32>
    %c0_183 = arith.constant 0 : index
    %c3_184 = arith.constant 3 : index
    %264 = memref.load %arg3[%c0_183, %c3_184] : memref<8x8xf32, #tpu.memory_space<smem>>
    %265 = vector.broadcast %264 : f32 to vector<16x16xf32>
    %266 = arith.mulf %265, %263 : vector<16x16xf32>
    %267 = arith.addf %200, %266 : vector<16x16xf32>
    %c1_185 = arith.constant 1 : index
    %c3_186 = arith.constant 3 : index
    %268 = memref.load %arg3[%c1_185, %c3_186] : memref<8x8xf32, #tpu.memory_space<smem>>
    %269 = vector.broadcast %268 : f32 to vector<16x16xf32>
    %270 = arith.mulf %269, %263 : vector<16x16xf32>
    %271 = arith.addf %204, %270 : vector<16x16xf32>
    %c2_187 = arith.constant 2 : index
    %c3_188 = arith.constant 3 : index
    %272 = memref.load %arg3[%c2_187, %c3_188] : memref<8x8xf32, #tpu.memory_space<smem>>
    %273 = vector.broadcast %272 : f32 to vector<16x16xf32>
    %274 = arith.mulf %273, %263 : vector<16x16xf32>
    %275 = arith.addf %208, %274 : vector<16x16xf32>
    %c3_189 = arith.constant 3 : index
    %c3_190 = arith.constant 3 : index
    %276 = memref.load %arg3[%c3_189, %c3_190] : memref<8x8xf32, #tpu.memory_space<smem>>
    %277 = vector.broadcast %276 : f32 to vector<16x16xf32>
    %278 = arith.mulf %277, %263 : vector<16x16xf32>
    %279 = arith.addf %212, %278 : vector<16x16xf32>
    %c4_191 = arith.constant 4 : index
    %c3_192 = arith.constant 3 : index
    %280 = memref.load %arg3[%c4_191, %c3_192] : memref<8x8xf32, #tpu.memory_space<smem>>
    %281 = vector.broadcast %280 : f32 to vector<16x16xf32>
    %282 = arith.mulf %281, %263 : vector<16x16xf32>
    %283 = arith.addf %216, %282 : vector<16x16xf32>
    %c5_193 = arith.constant 5 : index
    %c3_194 = arith.constant 3 : index
    %284 = memref.load %arg3[%c5_193, %c3_194] : memref<8x8xf32, #tpu.memory_space<smem>>
    %285 = vector.broadcast %284 : f32 to vector<16x16xf32>
    %286 = arith.mulf %285, %263 : vector<16x16xf32>
    %287 = arith.addf %220, %286 : vector<16x16xf32>
    %c6_195 = arith.constant 6 : index
    %c3_196 = arith.constant 3 : index
    %288 = memref.load %arg3[%c6_195, %c3_196] : memref<8x8xf32, #tpu.memory_space<smem>>
    %289 = vector.broadcast %288 : f32 to vector<16x16xf32>
    %290 = arith.mulf %289, %263 : vector<16x16xf32>
    %291 = arith.addf %224, %290 : vector<16x16xf32>
    %c7_197 = arith.constant 7 : index
    %c3_198 = arith.constant 3 : index
    %292 = memref.load %arg3[%c7_197, %c3_198] : memref<8x8xf32, #tpu.memory_space<smem>>
    %293 = vector.broadcast %292 : f32 to vector<16x16xf32>
    %294 = arith.mulf %293, %263 : vector<16x16xf32>
    %295 = arith.addf %228, %294 : vector<16x16xf32>
    %c0_199 = arith.constant 0 : index
    %c2_200 = arith.constant 2 : index
    %c0_201 = arith.constant 0 : index
    %c0_202 = arith.constant 0 : index
    %296 = vector.load %arg1[%c0_199, %c2_200, %c0_201, %c0_202] : memref<1x4x18x18xf32, #tpu.memory_space<vmem>>, vector<1x1x16x16xf32>
    %297 = vector.shape_cast %296 : vector<1x1x16x16xf32> to vector<16x16xf32>
    %c0_203 = arith.constant 0 : index
    %c2_204 = arith.constant 2 : index
    %c0_205 = arith.constant 0 : index
    %c1_206 = arith.constant 1 : index
    %298 = vector.load %arg1[%c0_203, %c2_204, %c0_205, %c1_206] : memref<1x4x18x18xf32, #tpu.memory_space<vmem>>, vector<1x1x16x16xf32>
    %299 = vector.shape_cast %298 : vector<1x1x16x16xf32> to vector<16x16xf32>
    %c0_207 = arith.constant 0 : index
    %c2_208 = arith.constant 2 : index
    %c0_209 = arith.constant 0 : index
    %c2_210 = arith.constant 2 : index
    %300 = vector.load %arg1[%c0_207, %c2_208, %c0_209, %c2_210] : memref<1x4x18x18xf32, #tpu.memory_space<vmem>>, vector<1x1x16x16xf32>
    %301 = vector.shape_cast %300 : vector<1x1x16x16xf32> to vector<16x16xf32>
    %c0_211 = arith.constant 0 : index
    %c2_212 = arith.constant 2 : index
    %c1_213 = arith.constant 1 : index
    %c0_214 = arith.constant 0 : index
    %302 = vector.load %arg1[%c0_211, %c2_212, %c1_213, %c0_214] : memref<1x4x18x18xf32, #tpu.memory_space<vmem>>, vector<1x1x16x16xf32>
    %303 = vector.shape_cast %302 : vector<1x1x16x16xf32> to vector<16x16xf32>
    %c0_215 = arith.constant 0 : index
    %c2_216 = arith.constant 2 : index
    %c1_217 = arith.constant 1 : index
    %c1_218 = arith.constant 1 : index
    %304 = vector.load %arg1[%c0_215, %c2_216, %c1_217, %c1_218] : memref<1x4x18x18xf32, #tpu.memory_space<vmem>>, vector<1x1x16x16xf32>
    %305 = vector.shape_cast %304 : vector<1x1x16x16xf32> to vector<16x16xf32>
    %c0_219 = arith.constant 0 : index
    %c2_220 = arith.constant 2 : index
    %c1_221 = arith.constant 1 : index
    %c2_222 = arith.constant 2 : index
    %306 = vector.load %arg1[%c0_219, %c2_220, %c1_221, %c2_222] : memref<1x4x18x18xf32, #tpu.memory_space<vmem>>, vector<1x1x16x16xf32>
    %307 = vector.shape_cast %306 : vector<1x1x16x16xf32> to vector<16x16xf32>
    %c0_223 = arith.constant 0 : index
    %c2_224 = arith.constant 2 : index
    %c2_225 = arith.constant 2 : index
    %c0_226 = arith.constant 0 : index
    %308 = vector.load %arg1[%c0_223, %c2_224, %c2_225, %c0_226] : memref<1x4x18x18xf32, #tpu.memory_space<vmem>>, vector<1x1x16x16xf32>
    %309 = vector.shape_cast %308 : vector<1x1x16x16xf32> to vector<16x16xf32>
    %c0_227 = arith.constant 0 : index
    %c2_228 = arith.constant 2 : index
    %c2_229 = arith.constant 2 : index
    %c1_230 = arith.constant 1 : index
    %310 = vector.load %arg1[%c0_227, %c2_228, %c2_229, %c1_230] : memref<1x4x18x18xf32, #tpu.memory_space<vmem>>, vector<1x1x16x16xf32>
    %311 = vector.shape_cast %310 : vector<1x1x16x16xf32> to vector<16x16xf32>
    %c0_231 = arith.constant 0 : index
    %c2_232 = arith.constant 2 : index
    %c2_233 = arith.constant 2 : index
    %c2_234 = arith.constant 2 : index
    %312 = vector.load %arg1[%c0_231, %c2_232, %c2_233, %c2_234] : memref<1x4x18x18xf32, #tpu.memory_space<vmem>>, vector<1x1x16x16xf32>
    %313 = vector.shape_cast %312 : vector<1x1x16x16xf32> to vector<16x16xf32>
    %c4_235 = arith.constant 4 : index
    %c0_236 = arith.constant 0 : index
    %314 = memref.load %arg2[%c4_235, %c0_236] : memref<8x9xf32, #tpu.memory_space<smem>>
    %315 = vector.broadcast %314 : f32 to vector<16x16xf32>
    %316 = arith.mulf %315, %297 : vector<16x16xf32>
    %c4_237 = arith.constant 4 : index
    %c1_238 = arith.constant 1 : index
    %317 = memref.load %arg2[%c4_237, %c1_238] : memref<8x9xf32, #tpu.memory_space<smem>>
    %318 = vector.broadcast %317 : f32 to vector<16x16xf32>
    %319 = arith.mulf %318, %299 : vector<16x16xf32>
    %320 = arith.addf %316, %319 : vector<16x16xf32>
    %c4_239 = arith.constant 4 : index
    %c2_240 = arith.constant 2 : index
    %321 = memref.load %arg2[%c4_239, %c2_240] : memref<8x9xf32, #tpu.memory_space<smem>>
    %322 = vector.broadcast %321 : f32 to vector<16x16xf32>
    %323 = arith.mulf %322, %301 : vector<16x16xf32>
    %324 = arith.addf %320, %323 : vector<16x16xf32>
    %c4_241 = arith.constant 4 : index
    %c3_242 = arith.constant 3 : index
    %325 = memref.load %arg2[%c4_241, %c3_242] : memref<8x9xf32, #tpu.memory_space<smem>>
    %326 = vector.broadcast %325 : f32 to vector<16x16xf32>
    %327 = arith.mulf %326, %303 : vector<16x16xf32>
    %328 = arith.addf %324, %327 : vector<16x16xf32>
    %c4_243 = arith.constant 4 : index
    %c4_244 = arith.constant 4 : index
    %329 = memref.load %arg2[%c4_243, %c4_244] : memref<8x9xf32, #tpu.memory_space<smem>>
    %330 = vector.broadcast %329 : f32 to vector<16x16xf32>
    %331 = arith.mulf %330, %305 : vector<16x16xf32>
    %332 = arith.addf %328, %331 : vector<16x16xf32>
    %c4_245 = arith.constant 4 : index
    %c5_246 = arith.constant 5 : index
    %333 = memref.load %arg2[%c4_245, %c5_246] : memref<8x9xf32, #tpu.memory_space<smem>>
    %334 = vector.broadcast %333 : f32 to vector<16x16xf32>
    %335 = arith.mulf %334, %307 : vector<16x16xf32>
    %336 = arith.addf %332, %335 : vector<16x16xf32>
    %c4_247 = arith.constant 4 : index
    %c6_248 = arith.constant 6 : index
    %337 = memref.load %arg2[%c4_247, %c6_248] : memref<8x9xf32, #tpu.memory_space<smem>>
    %338 = vector.broadcast %337 : f32 to vector<16x16xf32>
    %339 = arith.mulf %338, %309 : vector<16x16xf32>
    %340 = arith.addf %336, %339 : vector<16x16xf32>
    %c4_249 = arith.constant 4 : index
    %c7_250 = arith.constant 7 : index
    %341 = memref.load %arg2[%c4_249, %c7_250] : memref<8x9xf32, #tpu.memory_space<smem>>
    %342 = vector.broadcast %341 : f32 to vector<16x16xf32>
    %343 = arith.mulf %342, %311 : vector<16x16xf32>
    %344 = arith.addf %340, %343 : vector<16x16xf32>
    %c4_251 = arith.constant 4 : index
    %c8_252 = arith.constant 8 : index
    %345 = memref.load %arg2[%c4_251, %c8_252] : memref<8x9xf32, #tpu.memory_space<smem>>
    %346 = vector.broadcast %345 : f32 to vector<16x16xf32>
    %347 = arith.mulf %346, %313 : vector<16x16xf32>
    %348 = arith.addf %344, %347 : vector<16x16xf32>
    %c0_253 = arith.constant 0 : index
    %c4_254 = arith.constant 4 : index
    %349 = memref.load %arg3[%c0_253, %c4_254] : memref<8x8xf32, #tpu.memory_space<smem>>
    %350 = vector.broadcast %349 : f32 to vector<16x16xf32>
    %351 = arith.mulf %350, %348 : vector<16x16xf32>
    %352 = arith.addf %267, %351 : vector<16x16xf32>
    %c1_255 = arith.constant 1 : index
    %c4_256 = arith.constant 4 : index
    %353 = memref.load %arg3[%c1_255, %c4_256] : memref<8x8xf32, #tpu.memory_space<smem>>
    %354 = vector.broadcast %353 : f32 to vector<16x16xf32>
    %355 = arith.mulf %354, %348 : vector<16x16xf32>
    %356 = arith.addf %271, %355 : vector<16x16xf32>
    %c2_257 = arith.constant 2 : index
    %c4_258 = arith.constant 4 : index
    %357 = memref.load %arg3[%c2_257, %c4_258] : memref<8x8xf32, #tpu.memory_space<smem>>
    %358 = vector.broadcast %357 : f32 to vector<16x16xf32>
    %359 = arith.mulf %358, %348 : vector<16x16xf32>
    %360 = arith.addf %275, %359 : vector<16x16xf32>
    %c3_259 = arith.constant 3 : index
    %c4_260 = arith.constant 4 : index
    %361 = memref.load %arg3[%c3_259, %c4_260] : memref<8x8xf32, #tpu.memory_space<smem>>
    %362 = vector.broadcast %361 : f32 to vector<16x16xf32>
    %363 = arith.mulf %362, %348 : vector<16x16xf32>
    %364 = arith.addf %279, %363 : vector<16x16xf32>
    %c4_261 = arith.constant 4 : index
    %c4_262 = arith.constant 4 : index
    %365 = memref.load %arg3[%c4_261, %c4_262] : memref<8x8xf32, #tpu.memory_space<smem>>
    %366 = vector.broadcast %365 : f32 to vector<16x16xf32>
    %367 = arith.mulf %366, %348 : vector<16x16xf32>
    %368 = arith.addf %283, %367 : vector<16x16xf32>
    %c5_263 = arith.constant 5 : index
    %c4_264 = arith.constant 4 : index
    %369 = memref.load %arg3[%c5_263, %c4_264] : memref<8x8xf32, #tpu.memory_space<smem>>
    %370 = vector.broadcast %369 : f32 to vector<16x16xf32>
    %371 = arith.mulf %370, %348 : vector<16x16xf32>
    %372 = arith.addf %287, %371 : vector<16x16xf32>
    %c6_265 = arith.constant 6 : index
    %c4_266 = arith.constant 4 : index
    %373 = memref.load %arg3[%c6_265, %c4_266] : memref<8x8xf32, #tpu.memory_space<smem>>
    %374 = vector.broadcast %373 : f32 to vector<16x16xf32>
    %375 = arith.mulf %374, %348 : vector<16x16xf32>
    %376 = arith.addf %291, %375 : vector<16x16xf32>
    %c7_267 = arith.constant 7 : index
    %c4_268 = arith.constant 4 : index
    %377 = memref.load %arg3[%c7_267, %c4_268] : memref<8x8xf32, #tpu.memory_space<smem>>
    %378 = vector.broadcast %377 : f32 to vector<16x16xf32>
    %379 = arith.mulf %378, %348 : vector<16x16xf32>
    %380 = arith.addf %295, %379 : vector<16x16xf32>
    %c5_269 = arith.constant 5 : index
    %c0_270 = arith.constant 0 : index
    %381 = memref.load %arg2[%c5_269, %c0_270] : memref<8x9xf32, #tpu.memory_space<smem>>
    %382 = vector.broadcast %381 : f32 to vector<16x16xf32>
    %383 = arith.mulf %382, %297 : vector<16x16xf32>
    %c5_271 = arith.constant 5 : index
    %c1_272 = arith.constant 1 : index
    %384 = memref.load %arg2[%c5_271, %c1_272] : memref<8x9xf32, #tpu.memory_space<smem>>
    %385 = vector.broadcast %384 : f32 to vector<16x16xf32>
    %386 = arith.mulf %385, %299 : vector<16x16xf32>
    %387 = arith.addf %383, %386 : vector<16x16xf32>
    %c5_273 = arith.constant 5 : index
    %c2_274 = arith.constant 2 : index
    %388 = memref.load %arg2[%c5_273, %c2_274] : memref<8x9xf32, #tpu.memory_space<smem>>
    %389 = vector.broadcast %388 : f32 to vector<16x16xf32>
    %390 = arith.mulf %389, %301 : vector<16x16xf32>
    %391 = arith.addf %387, %390 : vector<16x16xf32>
    %c5_275 = arith.constant 5 : index
    %c3_276 = arith.constant 3 : index
    %392 = memref.load %arg2[%c5_275, %c3_276] : memref<8x9xf32, #tpu.memory_space<smem>>
    %393 = vector.broadcast %392 : f32 to vector<16x16xf32>
    %394 = arith.mulf %393, %303 : vector<16x16xf32>
    %395 = arith.addf %391, %394 : vector<16x16xf32>
    %c5_277 = arith.constant 5 : index
    %c4_278 = arith.constant 4 : index
    %396 = memref.load %arg2[%c5_277, %c4_278] : memref<8x9xf32, #tpu.memory_space<smem>>
    %397 = vector.broadcast %396 : f32 to vector<16x16xf32>
    %398 = arith.mulf %397, %305 : vector<16x16xf32>
    %399 = arith.addf %395, %398 : vector<16x16xf32>
    %c5_279 = arith.constant 5 : index
    %c5_280 = arith.constant 5 : index
    %400 = memref.load %arg2[%c5_279, %c5_280] : memref<8x9xf32, #tpu.memory_space<smem>>
    %401 = vector.broadcast %400 : f32 to vector<16x16xf32>
    %402 = arith.mulf %401, %307 : vector<16x16xf32>
    %403 = arith.addf %399, %402 : vector<16x16xf32>
    %c5_281 = arith.constant 5 : index
    %c6_282 = arith.constant 6 : index
    %404 = memref.load %arg2[%c5_281, %c6_282] : memref<8x9xf32, #tpu.memory_space<smem>>
    %405 = vector.broadcast %404 : f32 to vector<16x16xf32>
    %406 = arith.mulf %405, %309 : vector<16x16xf32>
    %407 = arith.addf %403, %406 : vector<16x16xf32>
    %c5_283 = arith.constant 5 : index
    %c7_284 = arith.constant 7 : index
    %408 = memref.load %arg2[%c5_283, %c7_284] : memref<8x9xf32, #tpu.memory_space<smem>>
    %409 = vector.broadcast %408 : f32 to vector<16x16xf32>
    %410 = arith.mulf %409, %311 : vector<16x16xf32>
    %411 = arith.addf %407, %410 : vector<16x16xf32>
    %c5_285 = arith.constant 5 : index
    %c8_286 = arith.constant 8 : index
    %412 = memref.load %arg2[%c5_285, %c8_286] : memref<8x9xf32, #tpu.memory_space<smem>>
    %413 = vector.broadcast %412 : f32 to vector<16x16xf32>
    %414 = arith.mulf %413, %313 : vector<16x16xf32>
    %415 = arith.addf %411, %414 : vector<16x16xf32>
    %c0_287 = arith.constant 0 : index
    %c5_288 = arith.constant 5 : index
    %416 = memref.load %arg3[%c0_287, %c5_288] : memref<8x8xf32, #tpu.memory_space<smem>>
    %417 = vector.broadcast %416 : f32 to vector<16x16xf32>
    %418 = arith.mulf %417, %415 : vector<16x16xf32>
    %419 = arith.addf %352, %418 : vector<16x16xf32>
    %c1_289 = arith.constant 1 : index
    %c5_290 = arith.constant 5 : index
    %420 = memref.load %arg3[%c1_289, %c5_290] : memref<8x8xf32, #tpu.memory_space<smem>>
    %421 = vector.broadcast %420 : f32 to vector<16x16xf32>
    %422 = arith.mulf %421, %415 : vector<16x16xf32>
    %423 = arith.addf %356, %422 : vector<16x16xf32>
    %c2_291 = arith.constant 2 : index
    %c5_292 = arith.constant 5 : index
    %424 = memref.load %arg3[%c2_291, %c5_292] : memref<8x8xf32, #tpu.memory_space<smem>>
    %425 = vector.broadcast %424 : f32 to vector<16x16xf32>
    %426 = arith.mulf %425, %415 : vector<16x16xf32>
    %427 = arith.addf %360, %426 : vector<16x16xf32>
    %c3_293 = arith.constant 3 : index
    %c5_294 = arith.constant 5 : index
    %428 = memref.load %arg3[%c3_293, %c5_294] : memref<8x8xf32, #tpu.memory_space<smem>>
    %429 = vector.broadcast %428 : f32 to vector<16x16xf32>
    %430 = arith.mulf %429, %415 : vector<16x16xf32>
    %431 = arith.addf %364, %430 : vector<16x16xf32>
    %c4_295 = arith.constant 4 : index
    %c5_296 = arith.constant 5 : index
    %432 = memref.load %arg3[%c4_295, %c5_296] : memref<8x8xf32, #tpu.memory_space<smem>>
    %433 = vector.broadcast %432 : f32 to vector<16x16xf32>
    %434 = arith.mulf %433, %415 : vector<16x16xf32>
    %435 = arith.addf %368, %434 : vector<16x16xf32>
    %c5_297 = arith.constant 5 : index
    %c5_298 = arith.constant 5 : index
    %436 = memref.load %arg3[%c5_297, %c5_298] : memref<8x8xf32, #tpu.memory_space<smem>>
    %437 = vector.broadcast %436 : f32 to vector<16x16xf32>
    %438 = arith.mulf %437, %415 : vector<16x16xf32>
    %439 = arith.addf %372, %438 : vector<16x16xf32>
    %c6_299 = arith.constant 6 : index
    %c5_300 = arith.constant 5 : index
    %440 = memref.load %arg3[%c6_299, %c5_300] : memref<8x8xf32, #tpu.memory_space<smem>>
    %441 = vector.broadcast %440 : f32 to vector<16x16xf32>
    %442 = arith.mulf %441, %415 : vector<16x16xf32>
    %443 = arith.addf %376, %442 : vector<16x16xf32>
    %c7_301 = arith.constant 7 : index
    %c5_302 = arith.constant 5 : index
    %444 = memref.load %arg3[%c7_301, %c5_302] : memref<8x8xf32, #tpu.memory_space<smem>>
    %445 = vector.broadcast %444 : f32 to vector<16x16xf32>
    %446 = arith.mulf %445, %415 : vector<16x16xf32>
    %447 = arith.addf %380, %446 : vector<16x16xf32>
    %c0_303 = arith.constant 0 : index
    %c3_304 = arith.constant 3 : index
    %c0_305 = arith.constant 0 : index
    %c0_306 = arith.constant 0 : index
    %448 = vector.load %arg1[%c0_303, %c3_304, %c0_305, %c0_306] : memref<1x4x18x18xf32, #tpu.memory_space<vmem>>, vector<1x1x16x16xf32>
    %449 = vector.shape_cast %448 : vector<1x1x16x16xf32> to vector<16x16xf32>
    %c0_307 = arith.constant 0 : index
    %c3_308 = arith.constant 3 : index
    %c0_309 = arith.constant 0 : index
    %c1_310 = arith.constant 1 : index
    %450 = vector.load %arg1[%c0_307, %c3_308, %c0_309, %c1_310] : memref<1x4x18x18xf32, #tpu.memory_space<vmem>>, vector<1x1x16x16xf32>
    %451 = vector.shape_cast %450 : vector<1x1x16x16xf32> to vector<16x16xf32>
    %c0_311 = arith.constant 0 : index
    %c3_312 = arith.constant 3 : index
    %c0_313 = arith.constant 0 : index
    %c2_314 = arith.constant 2 : index
    %452 = vector.load %arg1[%c0_311, %c3_312, %c0_313, %c2_314] : memref<1x4x18x18xf32, #tpu.memory_space<vmem>>, vector<1x1x16x16xf32>
    %453 = vector.shape_cast %452 : vector<1x1x16x16xf32> to vector<16x16xf32>
    %c0_315 = arith.constant 0 : index
    %c3_316 = arith.constant 3 : index
    %c1_317 = arith.constant 1 : index
    %c0_318 = arith.constant 0 : index
    %454 = vector.load %arg1[%c0_315, %c3_316, %c1_317, %c0_318] : memref<1x4x18x18xf32, #tpu.memory_space<vmem>>, vector<1x1x16x16xf32>
    %455 = vector.shape_cast %454 : vector<1x1x16x16xf32> to vector<16x16xf32>
    %c0_319 = arith.constant 0 : index
    %c3_320 = arith.constant 3 : index
    %c1_321 = arith.constant 1 : index
    %c1_322 = arith.constant 1 : index
    %456 = vector.load %arg1[%c0_319, %c3_320, %c1_321, %c1_322] : memref<1x4x18x18xf32, #tpu.memory_space<vmem>>, vector<1x1x16x16xf32>
    %457 = vector.shape_cast %456 : vector<1x1x16x16xf32> to vector<16x16xf32>
    %c0_323 = arith.constant 0 : index
    %c3_324 = arith.constant 3 : index
    %c1_325 = arith.constant 1 : index
    %c2_326 = arith.constant 2 : index
    %458 = vector.load %arg1[%c0_323, %c3_324, %c1_325, %c2_326] : memref<1x4x18x18xf32, #tpu.memory_space<vmem>>, vector<1x1x16x16xf32>
    %459 = vector.shape_cast %458 : vector<1x1x16x16xf32> to vector<16x16xf32>
    %c0_327 = arith.constant 0 : index
    %c3_328 = arith.constant 3 : index
    %c2_329 = arith.constant 2 : index
    %c0_330 = arith.constant 0 : index
    %460 = vector.load %arg1[%c0_327, %c3_328, %c2_329, %c0_330] : memref<1x4x18x18xf32, #tpu.memory_space<vmem>>, vector<1x1x16x16xf32>
    %461 = vector.shape_cast %460 : vector<1x1x16x16xf32> to vector<16x16xf32>
    %c0_331 = arith.constant 0 : index
    %c3_332 = arith.constant 3 : index
    %c2_333 = arith.constant 2 : index
    %c1_334 = arith.constant 1 : index
    %462 = vector.load %arg1[%c0_331, %c3_332, %c2_333, %c1_334] : memref<1x4x18x18xf32, #tpu.memory_space<vmem>>, vector<1x1x16x16xf32>
    %463 = vector.shape_cast %462 : vector<1x1x16x16xf32> to vector<16x16xf32>
    %c0_335 = arith.constant 0 : index
    %c3_336 = arith.constant 3 : index
    %c2_337 = arith.constant 2 : index
    %c2_338 = arith.constant 2 : index
    %464 = vector.load %arg1[%c0_335, %c3_336, %c2_337, %c2_338] : memref<1x4x18x18xf32, #tpu.memory_space<vmem>>, vector<1x1x16x16xf32>
    %465 = vector.shape_cast %464 : vector<1x1x16x16xf32> to vector<16x16xf32>
    %c6_339 = arith.constant 6 : index
    %c0_340 = arith.constant 0 : index
    %466 = memref.load %arg2[%c6_339, %c0_340] : memref<8x9xf32, #tpu.memory_space<smem>>
    %467 = vector.broadcast %466 : f32 to vector<16x16xf32>
    %468 = arith.mulf %467, %449 : vector<16x16xf32>
    %c6_341 = arith.constant 6 : index
    %c1_342 = arith.constant 1 : index
    %469 = memref.load %arg2[%c6_341, %c1_342] : memref<8x9xf32, #tpu.memory_space<smem>>
    %470 = vector.broadcast %469 : f32 to vector<16x16xf32>
    %471 = arith.mulf %470, %451 : vector<16x16xf32>
    %472 = arith.addf %468, %471 : vector<16x16xf32>
    %c6_343 = arith.constant 6 : index
    %c2_344 = arith.constant 2 : index
    %473 = memref.load %arg2[%c6_343, %c2_344] : memref<8x9xf32, #tpu.memory_space<smem>>
    %474 = vector.broadcast %473 : f32 to vector<16x16xf32>
    %475 = arith.mulf %474, %453 : vector<16x16xf32>
    %476 = arith.addf %472, %475 : vector<16x16xf32>
    %c6_345 = arith.constant 6 : index
    %c3_346 = arith.constant 3 : index
    %477 = memref.load %arg2[%c6_345, %c3_346] : memref<8x9xf32, #tpu.memory_space<smem>>
    %478 = vector.broadcast %477 : f32 to vector<16x16xf32>
    %479 = arith.mulf %478, %455 : vector<16x16xf32>
    %480 = arith.addf %476, %479 : vector<16x16xf32>
    %c6_347 = arith.constant 6 : index
    %c4_348 = arith.constant 4 : index
    %481 = memref.load %arg2[%c6_347, %c4_348] : memref<8x9xf32, #tpu.memory_space<smem>>
    %482 = vector.broadcast %481 : f32 to vector<16x16xf32>
    %483 = arith.mulf %482, %457 : vector<16x16xf32>
    %484 = arith.addf %480, %483 : vector<16x16xf32>
    %c6_349 = arith.constant 6 : index
    %c5_350 = arith.constant 5 : index
    %485 = memref.load %arg2[%c6_349, %c5_350] : memref<8x9xf32, #tpu.memory_space<smem>>
    %486 = vector.broadcast %485 : f32 to vector<16x16xf32>
    %487 = arith.mulf %486, %459 : vector<16x16xf32>
    %488 = arith.addf %484, %487 : vector<16x16xf32>
    %c6_351 = arith.constant 6 : index
    %c6_352 = arith.constant 6 : index
    %489 = memref.load %arg2[%c6_351, %c6_352] : memref<8x9xf32, #tpu.memory_space<smem>>
    %490 = vector.broadcast %489 : f32 to vector<16x16xf32>
    %491 = arith.mulf %490, %461 : vector<16x16xf32>
    %492 = arith.addf %488, %491 : vector<16x16xf32>
    %c6_353 = arith.constant 6 : index
    %c7_354 = arith.constant 7 : index
    %493 = memref.load %arg2[%c6_353, %c7_354] : memref<8x9xf32, #tpu.memory_space<smem>>
    %494 = vector.broadcast %493 : f32 to vector<16x16xf32>
    %495 = arith.mulf %494, %463 : vector<16x16xf32>
    %496 = arith.addf %492, %495 : vector<16x16xf32>
    %c6_355 = arith.constant 6 : index
    %c8_356 = arith.constant 8 : index
    %497 = memref.load %arg2[%c6_355, %c8_356] : memref<8x9xf32, #tpu.memory_space<smem>>
    %498 = vector.broadcast %497 : f32 to vector<16x16xf32>
    %499 = arith.mulf %498, %465 : vector<16x16xf32>
    %500 = arith.addf %496, %499 : vector<16x16xf32>
    %c0_357 = arith.constant 0 : index
    %c6_358 = arith.constant 6 : index
    %501 = memref.load %arg3[%c0_357, %c6_358] : memref<8x8xf32, #tpu.memory_space<smem>>
    %502 = vector.broadcast %501 : f32 to vector<16x16xf32>
    %503 = arith.mulf %502, %500 : vector<16x16xf32>
    %504 = arith.addf %419, %503 : vector<16x16xf32>
    %c1_359 = arith.constant 1 : index
    %c6_360 = arith.constant 6 : index
    %505 = memref.load %arg3[%c1_359, %c6_360] : memref<8x8xf32, #tpu.memory_space<smem>>
    %506 = vector.broadcast %505 : f32 to vector<16x16xf32>
    %507 = arith.mulf %506, %500 : vector<16x16xf32>
    %508 = arith.addf %423, %507 : vector<16x16xf32>
    %c2_361 = arith.constant 2 : index
    %c6_362 = arith.constant 6 : index
    %509 = memref.load %arg3[%c2_361, %c6_362] : memref<8x8xf32, #tpu.memory_space<smem>>
    %510 = vector.broadcast %509 : f32 to vector<16x16xf32>
    %511 = arith.mulf %510, %500 : vector<16x16xf32>
    %512 = arith.addf %427, %511 : vector<16x16xf32>
    %c3_363 = arith.constant 3 : index
    %c6_364 = arith.constant 6 : index
    %513 = memref.load %arg3[%c3_363, %c6_364] : memref<8x8xf32, #tpu.memory_space<smem>>
    %514 = vector.broadcast %513 : f32 to vector<16x16xf32>
    %515 = arith.mulf %514, %500 : vector<16x16xf32>
    %516 = arith.addf %431, %515 : vector<16x16xf32>
    %c4_365 = arith.constant 4 : index
    %c6_366 = arith.constant 6 : index
    %517 = memref.load %arg3[%c4_365, %c6_366] : memref<8x8xf32, #tpu.memory_space<smem>>
    %518 = vector.broadcast %517 : f32 to vector<16x16xf32>
    %519 = arith.mulf %518, %500 : vector<16x16xf32>
    %520 = arith.addf %435, %519 : vector<16x16xf32>
    %c5_367 = arith.constant 5 : index
    %c6_368 = arith.constant 6 : index
    %521 = memref.load %arg3[%c5_367, %c6_368] : memref<8x8xf32, #tpu.memory_space<smem>>
    %522 = vector.broadcast %521 : f32 to vector<16x16xf32>
    %523 = arith.mulf %522, %500 : vector<16x16xf32>
    %524 = arith.addf %439, %523 : vector<16x16xf32>
    %c6_369 = arith.constant 6 : index
    %c6_370 = arith.constant 6 : index
    %525 = memref.load %arg3[%c6_369, %c6_370] : memref<8x8xf32, #tpu.memory_space<smem>>
    %526 = vector.broadcast %525 : f32 to vector<16x16xf32>
    %527 = arith.mulf %526, %500 : vector<16x16xf32>
    %528 = arith.addf %443, %527 : vector<16x16xf32>
    %c7_371 = arith.constant 7 : index
    %c6_372 = arith.constant 6 : index
    %529 = memref.load %arg3[%c7_371, %c6_372] : memref<8x8xf32, #tpu.memory_space<smem>>
    %530 = vector.broadcast %529 : f32 to vector<16x16xf32>
    %531 = arith.mulf %530, %500 : vector<16x16xf32>
    %532 = arith.addf %447, %531 : vector<16x16xf32>
    %c7_373 = arith.constant 7 : index
    %c0_374 = arith.constant 0 : index
    %533 = memref.load %arg2[%c7_373, %c0_374] : memref<8x9xf32, #tpu.memory_space<smem>>
    %534 = vector.broadcast %533 : f32 to vector<16x16xf32>
    %535 = arith.mulf %534, %449 : vector<16x16xf32>
    %c7_375 = arith.constant 7 : index
    %c1_376 = arith.constant 1 : index
    %536 = memref.load %arg2[%c7_375, %c1_376] : memref<8x9xf32, #tpu.memory_space<smem>>
    %537 = vector.broadcast %536 : f32 to vector<16x16xf32>
    %538 = arith.mulf %537, %451 : vector<16x16xf32>
    %539 = arith.addf %535, %538 : vector<16x16xf32>
    %c7_377 = arith.constant 7 : index
    %c2_378 = arith.constant 2 : index
    %540 = memref.load %arg2[%c7_377, %c2_378] : memref<8x9xf32, #tpu.memory_space<smem>>
    %541 = vector.broadcast %540 : f32 to vector<16x16xf32>
    %542 = arith.mulf %541, %453 : vector<16x16xf32>
    %543 = arith.addf %539, %542 : vector<16x16xf32>
    %c7_379 = arith.constant 7 : index
    %c3_380 = arith.constant 3 : index
    %544 = memref.load %arg2[%c7_379, %c3_380] : memref<8x9xf32, #tpu.memory_space<smem>>
    %545 = vector.broadcast %544 : f32 to vector<16x16xf32>
    %546 = arith.mulf %545, %455 : vector<16x16xf32>
    %547 = arith.addf %543, %546 : vector<16x16xf32>
    %c7_381 = arith.constant 7 : index
    %c4_382 = arith.constant 4 : index
    %548 = memref.load %arg2[%c7_381, %c4_382] : memref<8x9xf32, #tpu.memory_space<smem>>
    %549 = vector.broadcast %548 : f32 to vector<16x16xf32>
    %550 = arith.mulf %549, %457 : vector<16x16xf32>
    %551 = arith.addf %547, %550 : vector<16x16xf32>
    %c7_383 = arith.constant 7 : index
    %c5_384 = arith.constant 5 : index
    %552 = memref.load %arg2[%c7_383, %c5_384] : memref<8x9xf32, #tpu.memory_space<smem>>
    %553 = vector.broadcast %552 : f32 to vector<16x16xf32>
    %554 = arith.mulf %553, %459 : vector<16x16xf32>
    %555 = arith.addf %551, %554 : vector<16x16xf32>
    %c7_385 = arith.constant 7 : index
    %c6_386 = arith.constant 6 : index
    %556 = memref.load %arg2[%c7_385, %c6_386] : memref<8x9xf32, #tpu.memory_space<smem>>
    %557 = vector.broadcast %556 : f32 to vector<16x16xf32>
    %558 = arith.mulf %557, %461 : vector<16x16xf32>
    %559 = arith.addf %555, %558 : vector<16x16xf32>
    %c7_387 = arith.constant 7 : index
    %c7_388 = arith.constant 7 : index
    %560 = memref.load %arg2[%c7_387, %c7_388] : memref<8x9xf32, #tpu.memory_space<smem>>
    %561 = vector.broadcast %560 : f32 to vector<16x16xf32>
    %562 = arith.mulf %561, %463 : vector<16x16xf32>
    %563 = arith.addf %559, %562 : vector<16x16xf32>
    %c7_389 = arith.constant 7 : index
    %c8_390 = arith.constant 8 : index
    %564 = memref.load %arg2[%c7_389, %c8_390] : memref<8x9xf32, #tpu.memory_space<smem>>
    %565 = vector.broadcast %564 : f32 to vector<16x16xf32>
    %566 = arith.mulf %565, %465 : vector<16x16xf32>
    %567 = arith.addf %563, %566 : vector<16x16xf32>
    %c0_391 = arith.constant 0 : index
    %c7_392 = arith.constant 7 : index
    %568 = memref.load %arg3[%c0_391, %c7_392] : memref<8x8xf32, #tpu.memory_space<smem>>
    %569 = vector.broadcast %568 : f32 to vector<16x16xf32>
    %570 = arith.mulf %569, %567 : vector<16x16xf32>
    %571 = arith.addf %504, %570 : vector<16x16xf32>
    %c1_393 = arith.constant 1 : index
    %c7_394 = arith.constant 7 : index
    %572 = memref.load %arg3[%c1_393, %c7_394] : memref<8x8xf32, #tpu.memory_space<smem>>
    %573 = vector.broadcast %572 : f32 to vector<16x16xf32>
    %574 = arith.mulf %573, %567 : vector<16x16xf32>
    %575 = arith.addf %508, %574 : vector<16x16xf32>
    %c2_395 = arith.constant 2 : index
    %c7_396 = arith.constant 7 : index
    %576 = memref.load %arg3[%c2_395, %c7_396] : memref<8x8xf32, #tpu.memory_space<smem>>
    %577 = vector.broadcast %576 : f32 to vector<16x16xf32>
    %578 = arith.mulf %577, %567 : vector<16x16xf32>
    %579 = arith.addf %512, %578 : vector<16x16xf32>
    %c3_397 = arith.constant 3 : index
    %c7_398 = arith.constant 7 : index
    %580 = memref.load %arg3[%c3_397, %c7_398] : memref<8x8xf32, #tpu.memory_space<smem>>
    %581 = vector.broadcast %580 : f32 to vector<16x16xf32>
    %582 = arith.mulf %581, %567 : vector<16x16xf32>
    %583 = arith.addf %516, %582 : vector<16x16xf32>
    %c4_399 = arith.constant 4 : index
    %c7_400 = arith.constant 7 : index
    %584 = memref.load %arg3[%c4_399, %c7_400] : memref<8x8xf32, #tpu.memory_space<smem>>
    %585 = vector.broadcast %584 : f32 to vector<16x16xf32>
    %586 = arith.mulf %585, %567 : vector<16x16xf32>
    %587 = arith.addf %520, %586 : vector<16x16xf32>
    %c5_401 = arith.constant 5 : index
    %c7_402 = arith.constant 7 : index
    %588 = memref.load %arg3[%c5_401, %c7_402] : memref<8x8xf32, #tpu.memory_space<smem>>
    %589 = vector.broadcast %588 : f32 to vector<16x16xf32>
    %590 = arith.mulf %589, %567 : vector<16x16xf32>
    %591 = arith.addf %524, %590 : vector<16x16xf32>
    %c6_403 = arith.constant 6 : index
    %c7_404 = arith.constant 7 : index
    %592 = memref.load %arg3[%c6_403, %c7_404] : memref<8x8xf32, #tpu.memory_space<smem>>
    %593 = vector.broadcast %592 : f32 to vector<16x16xf32>
    %594 = arith.mulf %593, %567 : vector<16x16xf32>
    %595 = arith.addf %528, %594 : vector<16x16xf32>
    %c7_405 = arith.constant 7 : index
    %c7_406 = arith.constant 7 : index
    %596 = memref.load %arg3[%c7_405, %c7_406] : memref<8x8xf32, #tpu.memory_space<smem>>
    %597 = vector.broadcast %596 : f32 to vector<16x16xf32>
    %598 = arith.mulf %597, %567 : vector<16x16xf32>
    %599 = arith.addf %532, %598 : vector<16x16xf32>
    %c0_407 = arith.constant 0 : index
    %600 = memref.load %arg4[%c0_407] : memref<8xf32, #tpu.memory_space<smem>>
    %601 = vector.broadcast %600 : f32 to vector<16x16xf32>
    %602 = arith.addf %571, %601 : vector<16x16xf32>
    %c0_408 = arith.constant 0 : index
    %c0_409 = arith.constant 0 : index
    %c0_410 = arith.constant 0 : index
    %c0_411 = arith.constant 0 : index
    %603 = vector.load %arg5[%c0_408, %c0_409, %c0_410, %c0_411] : memref<1x8x16x16xf32, #tpu.memory_space<vmem>>, vector<1x1x16x16xf32>
    %604 = vector.shape_cast %603 : vector<1x1x16x16xf32> to vector<16x16xf32>
    %605 = vector.shape_cast %602 : vector<16x16xf32> to vector<1x1x16x16xf32>
    tpu.vector_store %arg5[%c0_408, %c0_409, %c0_410, %c0_411], %605 {strides = array<i32>} : memref<1x8x16x16xf32, #tpu.memory_space<vmem>>, vector<1x1x16x16xf32>,
    %c1_412 = arith.constant 1 : index
    %606 = memref.load %arg4[%c1_412] : memref<8xf32, #tpu.memory_space<smem>>
    %607 = vector.broadcast %606 : f32 to vector<16x16xf32>
    %608 = arith.addf %575, %607 : vector<16x16xf32>
    %c0_413 = arith.constant 0 : index
    %c1_414 = arith.constant 1 : index
    %c0_415 = arith.constant 0 : index
    %c0_416 = arith.constant 0 : index
    %609 = vector.load %arg5[%c0_413, %c1_414, %c0_415, %c0_416] : memref<1x8x16x16xf32, #tpu.memory_space<vmem>>, vector<1x1x16x16xf32>
    %610 = vector.shape_cast %609 : vector<1x1x16x16xf32> to vector<16x16xf32>
    %611 = vector.shape_cast %608 : vector<16x16xf32> to vector<1x1x16x16xf32>
    tpu.vector_store %arg5[%c0_413, %c1_414, %c0_415, %c0_416], %611 {strides = array<i32>} : memref<1x8x16x16xf32, #tpu.memory_space<vmem>>, vector<1x1x16x16xf32>,
    %c2_417 = arith.constant 2 : index
    %612 = memref.load %arg4[%c2_417] : memref<8xf32, #tpu.memory_space<smem>>
    %613 = vector.broadcast %612 : f32 to vector<16x16xf32>
    %614 = arith.addf %579, %613 : vector<16x16xf32>
    %c0_418 = arith.constant 0 : index
    %c2_419 = arith.constant 2 : index
    %c0_420 = arith.constant 0 : index
    %c0_421 = arith.constant 0 : index
    %615 = vector.load %arg5[%c0_418, %c2_419, %c0_420, %c0_421] : memref<1x8x16x16xf32, #tpu.memory_space<vmem>>, vector<1x1x16x16xf32>
    %616 = vector.shape_cast %615 : vector<1x1x16x16xf32> to vector<16x16xf32>
    %617 = vector.shape_cast %614 : vector<16x16xf32> to vector<1x1x16x16xf32>
    tpu.vector_store %arg5[%c0_418, %c2_419, %c0_420, %c0_421], %617 {strides = array<i32>} : memref<1x8x16x16xf32, #tpu.memory_space<vmem>>, vector<1x1x16x16xf32>,
    %c3_422 = arith.constant 3 : index
    %618 = memref.load %arg4[%c3_422] : memref<8xf32, #tpu.memory_space<smem>>
    %619 = vector.broadcast %618 : f32 to vector<16x16xf32>
    %620 = arith.addf %583, %619 : vector<16x16xf32>
    %c0_423 = arith.constant 0 : index
    %c3_424 = arith.constant 3 : index
    %c0_425 = arith.constant 0 : index
    %c0_426 = arith.constant 0 : index
    %621 = vector.load %arg5[%c0_423, %c3_424, %c0_425, %c0_426] : memref<1x8x16x16xf32, #tpu.memory_space<vmem>>, vector<1x1x16x16xf32>
    %622 = vector.shape_cast %621 : vector<1x1x16x16xf32> to vector<16x16xf32>
    %623 = vector.shape_cast %620 : vector<16x16xf32> to vector<1x1x16x16xf32>
    tpu.vector_store %arg5[%c0_423, %c3_424, %c0_425, %c0_426], %623 {strides = array<i32>} : memref<1x8x16x16xf32, #tpu.memory_space<vmem>>, vector<1x1x16x16xf32>,
    %c4_427 = arith.constant 4 : index
    %624 = memref.load %arg4[%c4_427] : memref<8xf32, #tpu.memory_space<smem>>
    %625 = vector.broadcast %624 : f32 to vector<16x16xf32>
    %626 = arith.addf %587, %625 : vector<16x16xf32>
    %c0_428 = arith.constant 0 : index
    %c4_429 = arith.constant 4 : index
    %c0_430 = arith.constant 0 : index
    %c0_431 = arith.constant 0 : index
    %627 = vector.load %arg5[%c0_428, %c4_429, %c0_430, %c0_431] : memref<1x8x16x16xf32, #tpu.memory_space<vmem>>, vector<1x1x16x16xf32>
    %628 = vector.shape_cast %627 : vector<1x1x16x16xf32> to vector<16x16xf32>
    %629 = vector.shape_cast %626 : vector<16x16xf32> to vector<1x1x16x16xf32>
    tpu.vector_store %arg5[%c0_428, %c4_429, %c0_430, %c0_431], %629 {strides = array<i32>} : memref<1x8x16x16xf32, #tpu.memory_space<vmem>>, vector<1x1x16x16xf32>,
    %c5_432 = arith.constant 5 : index
    %630 = memref.load %arg4[%c5_432] : memref<8xf32, #tpu.memory_space<smem>>
    %631 = vector.broadcast %630 : f32 to vector<16x16xf32>
    %632 = arith.addf %591, %631 : vector<16x16xf32>
    %c0_433 = arith.constant 0 : index
    %c5_434 = arith.constant 5 : index
    %c0_435 = arith.constant 0 : index
    %c0_436 = arith.constant 0 : index
    %633 = vector.load %arg5[%c0_433, %c5_434, %c0_435, %c0_436] : memref<1x8x16x16xf32, #tpu.memory_space<vmem>>, vector<1x1x16x16xf32>
    %634 = vector.shape_cast %633 : vector<1x1x16x16xf32> to vector<16x16xf32>
    %635 = vector.shape_cast %632 : vector<16x16xf32> to vector<1x1x16x16xf32>
    tpu.vector_store %arg5[%c0_433, %c5_434, %c0_435, %c0_436], %635 {strides = array<i32>} : memref<1x8x16x16xf32, #tpu.memory_space<vmem>>, vector<1x1x16x16xf32>,
    %c6_437 = arith.constant 6 : index
    %636 = memref.load %arg4[%c6_437] : memref<8xf32, #tpu.memory_space<smem>>
    %637 = vector.broadcast %636 : f32 to vector<16x16xf32>
    %638 = arith.addf %595, %637 : vector<16x16xf32>
    %c0_438 = arith.constant 0 : index
    %c6_439 = arith.constant 6 : index
    %c0_440 = arith.constant 0 : index
    %c0_441 = arith.constant 0 : index
    %639 = vector.load %arg5[%c0_438, %c6_439, %c0_440, %c0_441] : memref<1x8x16x16xf32, #tpu.memory_space<vmem>>, vector<1x1x16x16xf32>
    %640 = vector.shape_cast %639 : vector<1x1x16x16xf32> to vector<16x16xf32>
    %641 = vector.shape_cast %638 : vector<16x16xf32> to vector<1x1x16x16xf32>
    tpu.vector_store %arg5[%c0_438, %c6_439, %c0_440, %c0_441], %641 {strides = array<i32>} : memref<1x8x16x16xf32, #tpu.memory_space<vmem>>, vector<1x1x16x16xf32>,
    %c7_442 = arith.constant 7 : index
    %642 = memref.load %arg4[%c7_442] : memref<8xf32, #tpu.memory_space<smem>>
    %643 = vector.broadcast %642 : f32 to vector<16x16xf32>
    %644 = arith.addf %599, %643 : vector<16x16xf32>
    %c0_443 = arith.constant 0 : index
    %c7_444 = arith.constant 7 : index
    %c0_445 = arith.constant 0 : index
    %c0_446 = arith.constant 0 : index
    %645 = vector.load %arg5[%c0_443, %c7_444, %c0_445, %c0_446] : memref<1x8x16x16xf32, #tpu.memory_space<vmem>>, vector<1x1x16x16xf32>
    %646 = vector.shape_cast %645 : vector<1x1x16x16xf32> to vector<16x16xf32>
    %647 = vector.shape_cast %644 : vector<16x16xf32> to vector<1x1x16x16xf32>
    tpu.vector_store %arg5[%c0_443, %c7_444, %c0_445, %c0_446], %647 {strides = array<i32>} : memref<1x8x16x16xf32, #tpu.memory_space<vmem>>, vector<1x1x16x16xf32>,
    return
  }
  func.func @transform_0(%arg0: i32) -> (i32, i32, i32, i32) {
    %c0_i32 = arith.constant 0 : i32
    %c0_i32_0 = arith.constant 0 : i32
    %c0_i32_1 = arith.constant 0 : i32
    %c0_i32_2 = arith.constant 0 : i32
    return %arg0, %c0_i32, %c0_i32_0, %c0_i32_1 : i32, i32, i32, i32
  }
  func.func @transform_1(%arg0: i32) -> (i32, i32) {
    %c0_i32 = arith.constant 0 : i32
    %c0_i32_0 = arith.constant 0 : i32
    %c0_i32_1 = arith.constant 0 : i32
    return %c0_i32, %c0_i32_0 : i32, i32
  }
  func.func @transform_2(%arg0: i32) -> (i32, i32) {
    %c0_i32 = arith.constant 0 : i32
    %c0_i32_0 = arith.constant 0 : i32
    %c0_i32_1 = arith.constant 0 : i32
    return %c0_i32, %c0_i32_0 : i32, i32
  }
  func.func @transform_3(%arg0: i32) -> i32 {
    %c0_i32 = arith.constant 0 : i32
    %c0_i32_0 = arith.constant 0 : i32
    return %c0_i32 : i32
  }
  func.func @transform_4(%arg0: i32) -> (i32, i32, i32, i32) {
    %c0_i32 = arith.constant 0 : i32
    %c0_i32_0 = arith.constant 0 : i32
    %c0_i32_1 = arith.constant 0 : i32
    %c0_i32_2 = arith.constant 0 : i32
    return %arg0, %c0_i32, %c0_i32_0, %c0_i32_1 : i32, i32, i32, i32
  }
}

</mosaic_0001>

<bundles_post_ra>
// kernel: tpu_custom_call.1
= control target key start
LH: loop header
LB: loop body
LE: loop exit
PB: predicated region body
PF: predicated region fallthrough
CT: control target
= control target key end

     0   :  { %s3451_s0 = inlined_call_operand.vmem [shape: f32[2,4,18,18], index: 0, kind: input, shape index: {}]   ;;  %s3452_s1 = inlined_call_operand.vmem [shape: f32[8,9], index: 1, kind: input, shape index: {}]   ;;  %s3453_s2 = inlined_call_operand.vmem [shape: f32[8,8], index: 2, kind: input, shape index: {}]   ;;  %s3454_s3 = inlined_call_operand.vmem [shape: f32[8], index: 3, kind: input, shape index: {}]   ;;  %s3455_s4 = inlined_call_operand.hbm [shape: f32[2,8,16,16], index: 4, kind: output, shape index: {}]  }
   0x1   :  { %3486 = sst [smem:[#allocation30_spill]] %s3451_s0 }
   0x2   :  { %3487 = sst [smem:[#allocation31_spill]] %s3452_s1 }
   0x3   :  { %3488 = sst [smem:[#allocation32_spill]] %s3453_s2 }
   0x4   :  { %3489 = sst [smem:[#allocation33_spill]] %s3454_s3 }
   0x5   :  { %3490 = sst [smem:[#allocation34_spill]] %s3455_s4 }
   0x6   :  { %9 = vsyncpa [#allocation4], 0 }
   0x7   :  { %10 = vsyncpa [#allocation6], 0 }
   0x8   :  { %11 = vsyncpa [#allocation3], 0 }
   0x9   :  { %13 = vsyncpa [#allocation3 + $0x1], 0  ;;  %s2015_s15 = smov 0   ;;  %s2017_s16 = smov 0  }
   0xa   :  { %s2019_s17 = smov 0   ;;  %s2021_s18 = smov 0  }
   0xb LB: > { %3491 = sst [smem:[#allocation12_spill]] %s1968_s15  ;;  %s2036_s19 = sadd.s32 4294967295, %s1980_s18   ;;  %s1980_s18 = sphi %s2021_s18, %s3593_s18   ;;  %s1976_s17 = sphi %s2019_s17, %s3596_s17   ;;  %s1972_s16 = sphi %s2017_s16, %s3595_s16   ;;  %s1968_s15 = sphi %s2015_s15, %s3594_s15  }
   0xc   : > { %3492 = sst [smem:[#allocation13_spill]] %s1972_s16  ;;  %s1593_s20 = sadd.s32 4294967294, %s1980_s18  }
   0xd   : > { %3493 = sst [smem:[#allocation14_spill]] %s1976_s17  ;;  %s2040_s21 = sadd.s32 1, %s1980_s18  }
   0xe   : > { %3494 = sst [smem:[#allocation15_spill]] %s1980_s18  ;;  %s115_s22 = sadd.s32 1, %s1976_s17 }
   0xf   : > { %3495 = sst [smem:[#allocation16_spill]] %s2036_s19  ;;  %s112_s23 = ssub.s32 %s1980_s18, %s2040_s21 }
  0x10   : > { %3496 = sst [smem:[#allocation17_spill]] %s2040_s21  ;;  %p125_p0 = scmp.ne.s32.totalorder %s1976_s17, %s1972_s16 }
  0x11   : > { %p113_p1 = scmp.eq.s32.totalorder %s112_s23, 0  ;;  %p126_p2 = scmp.eq.s32.totalorder %s2036_s19, 1 }
  0x12   : > { %p131_p3 = scmp.ne.s32.totalorder %s1972_s16, %s1968_s15  ;;  %p132_p4 = scmp.eq.s32.totalorder %s1593_s20, 1 }
  0x13   : > { %s2051_s24 = scalar_select %p113_p1, %s1976_s17, %s115_s22  }
  0x14   : > { %p2053_p5 = por %p126_p2, %p125_p0  ;;  %p2057_p6 = por %p132_p4, %p131_p3 }
  0x15   : > { %3497 = sst [smem:[#allocation18_spill]] %s2051_s24  ;;  %p1594_p7 = scmp.ge.s32.totalorder %s1980_s18, 1 }
  0x16   : > { %s3498_s25 = scalar_select %p2053_p5, 1, 0 }
  0x17   : > { %s3500_s26 = scalar_select %p2057_p6, 1, 0 }
  0x18   : > { %3499 = sst [smem:[#allocation19_spill]] %s3498_s25  ;;  %p139_p8 = scmp.lt.s32.totalorder %s1980_s18, 3 }
  0x19   : > { %3501 = sst [smem:[#allocation20_spill]] %s3500_s26  ;;  %p3456_p9 = scmp.eq.s32.totalorder %s2036_s19, 0 }
  0x1a   : > { %p2064_p10 = pnand %p1594_p7, %p139_p8  ;;  %s3503_s2 = sld [smem:[#allocation32_spill]] }
  0x1b   : > { %s3504_s1 = sld [smem:[#allocation31_spill]]  ;;  %s3506_s3 = sld [smem:[#allocation33_spill]] }
  0x1c   : > { %s3502_s27 = scalar_select %p2064_p10, 1, 0 }
  0x1d   : > { %p1799_p11 = pneg %p2064_p10 }
  0x1f   : > { %p2078_p12 = pnand %p3456_p9, %p1799_p11 }
  0x20   : > { %s163_s30 = sshll.u32 %s3503_s2, 4  ;;  %s164_s30 = int_to_ptr.vmem [resolvable:$true] %s163_s30 }
  0x21   : > { %s152_s7 = sshll.u32 %s3504_s1, 4  ;;  %s174_s11 = sshll.u32 %s3506_s3, 4  ;;  %s153_s7 = int_to_ptr.vmem [resolvable:$true] %s152_s7  ;;  %s2085_s11 = int_to_ptr.vmem [resolvable:$true] %s174_s11 }
  0x22   : > { %s1865_s12 = scalar_lea.vmem %s164_s30, 128  ;;  %p1867_p0 = pneg %p2078_p12 }
  0x23   : > { %p1866_p13 = scmp.ne.s32.totalorder %s164_s30, %s1865_s12  ;;  %p1873_p3 = scmp.lt.s32.totalorder %s164_s30, %s164_s30 }
  0x24   : > { %p1874_p4 = scmp.lt.s32.totalorder %s1865_s12, %s1865_s12 }
  0x25   : > { %p1868_p1 = pnand %p1867_p0, %p1866_p13 }
  0x26   : > { %p1875_p7 = por %p1874_p4, %p1873_p3 }
  0x27   : > { %p1869_p2 = pneg %p1868_p1 }
  0x29   : > { %p1876_p8 = pnand %p1875_p7, %p1869_p2 }
  0x2b   : > { %1879 = shalt.err (!%p1876_p8)
}
  0x2c   : > { %s1982_s13 = smov [#allocation5]   ;;  %s1880_s14 = scalar_lea.vmem %s153_s7, 128 }
  0x2d   : > { %1805 = dma.vmem_to_smem (!%p2078_p12), %s164_s30, 128, %s1982_s13, [#allocation6]  }
  0x2e   : > { %p1881_p11 = scmp.ne.s32.totalorder %s153_s7, %s1880_s14  ;;  %p1888_p5 = scmp.lt.s32.totalorder %s153_s7, %s153_s7 }
  0x2f   : > { %p1889_p10 = scmp.lt.s32.totalorder %s1880_s14, %s1880_s14 }
  0x30   : > { %p1883_p9 = pnand %p1881_p11, %p1867_p0 }
  0x31   : > { %p1890_p13 = por %p1889_p10, %p1888_p5 }
  0x32   : > { %p1884_p6 = pneg %p1883_p9 }
  0x34   : > { %p1891_p1 = pnand %p1890_p13, %p1884_p6 }
  0x36   : > { %1894 = shalt.err (!%p1891_p1)
}
  0x37   : > { %s1983_s20 = smov [#allocation2]   ;;  %s1895_s22 = scalar_lea.vmem %s2085_s11, 16 }
  0x38   : > { %1802 = dma.vmem_to_smem (!%p2078_p12), %s153_s7, 128, %s1983_s20, [#allocation4]  }
  0x39   : > { %p1896_p2 = scmp.ne.s32.totalorder %s2085_s11, %s1895_s22  ;;  %p1903_p9 = scmp.lt.s32.totalorder %s2085_s11, %s2085_s11 }
  0x3a   : > { %p1904_p7 = scmp.lt.s32.totalorder %s1895_s22, %s1895_s22 }
  0x3b   : > { %p1898_p3 = pnand %p1896_p2, %p1867_p0 }
  0x3c   : > { %p1905_p5 = por %p1904_p7, %p1903_p9 }
  0x3d   : > { %p1899_p4 = pneg %p1898_p3 }
  0x3f   : > { %p1906_p6 = pnand %p1905_p5, %p1899_p4 }
  0x41   : > { %1909 = shalt.err (!%p1906_p6)
}
  0x42   : > { %s1984_s23 = smov [#allocation7]   ;;  %p3507_p10 = scmp.ne.s32.totalorder %s3502_s27, 0 }
  0x43   : > { %1808 = dma.vmem_to_smem (!%p2078_p12), %s2085_s11, 16, %s1984_s23, [#allocation6]  }
  0x44   : > { %195 = sbr.rel (%p3507_p10) target bundleno = 446 (0x1be), region = 36 }
  0x4b   : > { %p3508_p8 = scmp.eq.s32.totalorder %s2036_s19, 0 }
  0x4d   : > { %1955 = dma.done.wait (%p3508_p8), [#allocation4], 128   ;;  %p3509_p0 = pmov %p3508_p8 }
  0x4f   : > { %1957 = vsyncadd (%p3509_p0), [#allocation4], 4294967168  ;;  %p3510_p11 = pmov %p3509_p0 }
  0x50   : > { %p3511_p13 = pmov %p3509_p0 }
  0x51   : > { %1959 = dma.done.wait (%p3510_p11), [#allocation6], 144  }
  0x52   : > { %1961 = vsyncadd (%p3511_p13), [#allocation6], 4294967152 }
  0x53   : > { %209 = sfence }
  0x54   : > { %p230_p1 = scmp.lt.s32.totalorder %s2036_s19, 1  ;;  %s1606_s28 = sld [smem:[#allocation2 + $0x2]]  ;;  %vm1434_vm0 = vcmask 130048  }
  0x55   : > { %s1605_s29 = sld [smem:[#allocation2 + $0x1]]  ;;  %s1608_s30 = sld [smem:[#allocation2 + $0x4]] }
  0x56   : > { %s231_s27 = scalar_select %p230_p1, %s2036_s19, 1 }
  0x57   : > { %s3512_s0 = sld [smem:[#allocation30_spill]]  ;;  %s1609_s9 = sld [smem:[#allocation2 + $0x5]] }
  0x58   : > { %s1784_s5 = smul.u32 96, %s231_s27  ;;  %s3461_s10 = smov 126  }
  0x59   : > { %s3459_s11 = smov 127   ;;  %s1611_s12 = sld [smem:[#allocation2 + $0x7]] }
  0x5a   : > { %v260_v0 = vstv %s1606_s28  ;;  %s1612_s13 = sld [smem:[#allocation2 + $0x8]]  ;;  %s1621_s14 = sld [smem:[#allocation2 + $0x81]] }
  0x5b   : > { %v246_v3 = vstv %s1605_s29  ;;  %v280_v9 = vstv %s1608_s30  ;;  %s1622_s20 = sld [smem:[#allocation2 + $0x82]]  ;;  %s1624_s22 = sld [smem:[#allocation2 + $0x84]] }
  0x5c   : > { %s1625_s23 = sld [smem:[#allocation2 + $0x85]]  ;;  %s1627_s28 = sld [smem:[#allocation2 + $0x87]] }
  0x5d   : > { %s2124_s8 = scalar_lea.vmem %s3512_s0, %s1784_s5  ;;  %v294_v13 = vstv %s1609_s9  ;;  %s1628_s29 = sld [smem:[#allocation2 + $0x88]] }
  0x5e   : > { %v2127_v1 = vld [vmem:[%s2124_s8] sm:$0xff]  ;;  %v2130_v2 = vld [vmem:[%s2124_s8 + $0x8] sm:$0xff]  ;;  %s1644_s27 = sld [smem:[#allocation2 + $0x101]]  ;;  %s1645_s30 = sld [smem:[#allocation2 + $0x102]]  ;;  %v2194_v44 = vld [vmem:[%s2124_s8 + $0x18] sm:$0xff] }
  0x5f   : > { %v261_v4 = vmul.f32 %v260_v0, %v2127_v1  ;;  %v247_v5 = vmul.f32 %v246_v3, %v2127_v1  ;;  %v262_v6 = vmul.f32 %v260_v0, %v2130_v2  ;;  %v248_v7 = vmul.f32 %v246_v3, %v2130_v2  ;;  %v2139_v8 = vld [vmem:[%s2124_s8 + $0x9] sm:$0xff]  ;;  %v2142_v10 = vld [vmem:[%s2124_s8 + $0x1] sm:$0xff]  ;;  %s1647_s5 = sld [smem:[#allocation2 + $0x104]]  ;;  %s1648_s6 = sld [smem:[#allocation2 + $0x105]]  ;;  %v2208_v52 = vld [vmem:[%s2124_s8 + $0x19] sm:$0xff] }
  0x60   : > { %v282_v11 = vmul.f32 %v280_v9, %v2139_v8  ;;  %v281_v12 = vmul.f32 %v280_v9, %v2142_v10  ;;  %v296_v14 = vmul.f32 %v294_v13, %v2139_v8  ;;  %v295_v15 = vmul.f32 %v294_v13, %v2142_v10  ;;  %v2153_v16 = vld [vmem:[%s2124_s8 + $0xa] sm:$0xff]  ;;  %v2156_v18 = vld [vmem:[%s2124_s8 + $0x2] sm:$0xff]  ;;  %s1650_s7 = sld [smem:[#allocation2 + $0x107]]  ;;  %s1651_s9 = sld [smem:[#allocation2 + $0x108]]  ;;  %v2222_v60 = vld [vmem:[%s2124_s8 + $0x1a] sm:$0xff] }
  0x61   : > { %265 = vrot.lane.b32.xlu1 %v261_v4, %s3461_s10  ;;  %251 = vrot.lane.b32.xlu0 %v247_v5, %s3459_s11  ;;  %v314_v17 = vstv %s1611_s12  ;;  %v328_v21 = vstv %s1612_s13  ;;  %s1661_s12 = sld [smem:[#allocation2 + $0x181]]  ;;  %s1662_s13 = sld [smem:[#allocation2 + $0x182]] }
  0x62   : > { %v316_v19 = vmul.f32 %v314_v17, %v2153_v16  ;;  %v315_v20 = vmul.f32 %v314_v17, %v2156_v18  ;;  %v330_v22 = vmul.f32 %v328_v21, %v2153_v16  ;;  %v329_v23 = vmul.f32 %v328_v21, %v2156_v18  ;;  %v2191_v42 = vld [vmem:[%s2124_s8 + $0x20] sm:$0xff]  ;;  %s2398_s0 = sld [smem:[#allocation5 + $0x81]]  ;;  %s3513_s1 = smov 126  }
  0x63   : > { %v378_v24 = vstv %s1621_s14  ;;  %v392_v27 = vstv %s1622_s20  ;;  %v412_v30 = vstv %s1624_s22  ;;  %v426_v33 = vstv %s1625_s23  ;;  %s1664_s14 = sld [smem:[#allocation2 + $0x184]]  ;;  %s1665_s20 = sld [smem:[#allocation2 + $0x185]] }
  0x64   : > { %v380_v25 = vmul.f32 %v378_v24, %v2130_v2  ;;  %v379_v26 = vmul.f32 %v378_v24, %v2127_v1  ;;  %v394_v28 = vmul.f32 %v392_v27, %v2130_v2  ;;  %v393_v29 = vmul.f32 %v392_v27, %v2127_v1  ;;  %v2205_v50 = vld [vmem:[%s2124_s8 + $0x21] sm:$0xff]  ;;  %s1667_s22 = sld [smem:[#allocation2 + $0x187]]  ;;  %s1668_s23 = sld [smem:[#allocation2 + $0x188]] }
  0x65   : > { %267 = vrot.lane.b32.xlu1 %v262_v6, %s3461_s10  ;;  %253 = vrot.lane.b32.xlu0 %v248_v7, %s3459_s11  ;;  %v414_v31 = vmul.f32 %v412_v30, %v2139_v8  ;;  %v413_v32 = vmul.f32 %v412_v30, %v2142_v10  ;;  %v428_v34 = vmul.f32 %v426_v33, %v2139_v8  ;;  %v446_v36 = vstv %s1627_s28  ;;  %v2219_v58 = vld [vmem:[%s2124_s8 + $0x22] sm:$0xff]  ;;  %s1684_s28 = sld [smem:[#allocation2 + $0x201]]  ;;  %s2425_s17 = sld [smem:[#allocation2 + $0x100]] }
  0x66   : > { %v427_v35 = vmul.f32 %v426_v33, %v2142_v10  ;;  %v448_v37 = vmul.f32 %v446_v36, %v2153_v16  ;;  %v447_v38 = vmul.f32 %v446_v36, %v2156_v18  ;;  %v460_v39 = vstv %s1628_s29  ;;  %s1685_s29 = sld [smem:[#allocation2 + $0x202]]  ;;  %v2274_v36 = vld [vmem:[%s2124_s8 + $0x31] sm:$0xff]  ;;  %s2414_s2 = sld [smem:[#allocation5 + $0x201]] }
  0x67   : > { %v462_v40 = vmul.f32 %v460_v39, %v2153_v16  ;;  %v461_v41 = vmul.f32 %v460_v39, %v2156_v18  ;;  %v533_v43 = vstv %s1644_s27  ;;  %v547_v47 = vstv %s1645_s30  ;;  %s1687_s27 = sld [smem:[#allocation2 + $0x204]]  ;;  %s1701_s30 = sld [smem:[#allocation2 + $0x281]] }
  0x68   : > { %v535_v45 = vmul.f32 %v2191_v42, %v533_v43  ;;  %v534_v46 = vmul.f32 %v2194_v44, %v533_v43  ;;  %v549_v48 = vmul.f32 %v2191_v42, %v547_v47  ;;  %v548_v49 = vmul.f32 %v2194_v44, %v547_v47  ;;  %s2416_s3 = sld [smem:[#allocation5 + $0x281]]  ;;  %s2431_s21 = sld [smem:[#allocation2 + $0x385]] }
  0x69   : > { %287 = vrot.lane.b32.xlu1 %v282_v11, %s3459_s11  ;;  %285 = vrot.lane.b32.xlu0 %v281_v12, %s3459_s11  ;;  %v567_v51 = vstv %s1647_s5  ;;  %v581_v55 = vstv %s1648_s6  ;;  %s1702_s5 = sld [smem:[#allocation2 + $0x282]]  ;;  %s2280_s6 = sld [smem:[#allocation2]] }
  0x6a   : > { %v569_v53 = vmul.f32 %v2205_v50, %v567_v51  ;;  %v568_v54 = vmul.f32 %v2208_v52, %v567_v51  ;;  %v583_v56 = vmul.f32 %v2205_v50, %v581_v55  ;;  %v582_v57 = vmul.f32 %v2208_v52, %v581_v55  ;;  %v2297_v51 = vld [vmem:[%s2124_s8 + $0x48] sm:$0xff]  ;;  %s2423_s24 = sld [smem:[#allocation5 + $0x301]]  ;;  %s3514_s26 = smov 127  }
  0x6b   : > { %v601_v59 = vstv %s1650_s7  ;;  %v615_v63 = vstv %s1651_s9  ;;  %v681_v4 = vstv %s1661_s12  ;;  %v695_v7 = vstv %s1662_s13  ;;  %s1724_s7 = sld [smem:[#allocation2 + $0x301]]  ;;  %s2286_s9 = sld [smem:[#allocation2 + $0x3]] }
  0x6c   : > { %v603_v61 = vmul.f32 %v2219_v58, %v601_v59  ;;  %v602_v62 = vmul.f32 %v2222_v60, %v601_v59  ;;  %v617_v0 = vmul.f32 %v2219_v58, %v615_v63  ;;  %v616_v3 = vmul.f32 %v2222_v60, %v615_v63  ;;  %s1725_s12 = sld [smem:[#allocation2 + $0x302]]  ;;  %s1741_s13 = sld [smem:[#allocation2 + $0x381]] }
  0x6d   : > { %301 = vrot.lane.b32.xlu1 %v296_v14, %s3461_s10  ;;  %299 = vrot.lane.b32.xlu0 %v295_v15, %s3461_s10  ;;  %v683_v5 = vmul.f32 %v2191_v42, %v681_v4  ;;  %v682_v6 = vmul.f32 %v2194_v44, %v681_v4  ;;  %v697_v9 = vmul.f32 %v2191_v42, %v695_v7  ;;  %v715_v12 = vstv %s1664_s14  ;;  %s2305_s14 = sld [smem:[#allocation2 + $0x205]]  ;;  %s2438_s15 = sld [smem:[#allocation5 + $0x381]] }
  0x6e   : > { %v696_v11 = vmul.f32 %v2194_v44, %v695_v7  ;;  %v717_v13 = vmul.f32 %v2205_v50, %v715_v12  ;;  %v716_v14 = vmul.f32 %v2208_v52, %v715_v12  ;;  %v729_v15 = vstv %s1665_s20  ;;  %s2307_s20 = sld [smem:[#allocation2 + $0x6]]  ;;  %s2440_s18 = sld [smem:[#allocation2 + $0x103]] }
  0x6f   : > { %v731_v17 = vmul.f32 %v2205_v50, %v729_v15  ;;  %v836_v27 = vstv %s1684_s28  ;;  %v984_v39 = vstv %s1701_s30  ;;  %v998_v43 = vstv %s1702_s5  ;;  %s2333_s28 = sld [smem:[#allocation2 + $0x80]]  ;;  %s2344_s30 = sld [smem:[#allocation2 + $0x83]] }
  0x70   : > { %v242_v47 = vstv %s2280_s6  ;;  %s2348_s5 = sld [smem:[#allocation5]]  ;;  %s3027_s25 = sld [smem:[#allocation5 + $0x107]] }
  0x71   : > { %321 = vrot.lane.b32.xlu1 %v316_v19, %s3459_s11  ;;  %319 = vrot.lane.b32.xlu0 %v315_v20, %s3459_s11  ;;  %v730_v19 = vmul.f32 %v2208_v52, %v729_v15  ;;  %v749_v20 = vstv %s1667_s22  ;;  %v244_v63 = vmul.f32 %v242_v47, %v2130_v2  ;;  %s2315_s22 = sld [smem:[#allocation2 + $0x284]]  ;;  %s2352_s6 = sld [smem:[#allocation5 + $0x80]] }
  0x72   : > { %v751_v21 = vmul.f32 %v2219_v58, %v749_v20  ;;  %s3096_s4 = sld [smem:[#allocation5 + $0x207]]  ;;  %s3148_s16 = sld [smem:[#allocation7 + $0x2]] }
  0x73   : > { %s3106_s19 = sld [smem:[#allocation5 + $0x287]] }
  0x75   : > { %335 = vrot.lane.b32.xlu1 %v330_v22, %s3461_s10  ;;  %333 = vrot.lane.b32.xlu0 %v329_v23, %s3461_s10  ;;  %v750_v22 = vmul.f32 %v2222_v60, %v749_v20  ;;  %v763_v23 = vstv %s1668_s23  ;;  %s2323_s23 = sld [smem:[#allocation2 + $0x382]] }
  0x76   : > { %v765_v24 = vmul.f32 %v2219_v58, %v763_v23  ;;  %3525 = sst [smem:[#allocation28_spill]] %s3027_s25 }
  0x79   : > { %385 = vrot.lane.b32.xlu1 %v380_v25, %s3459_s11  ;;  %383 = vrot.lane.b32.xlu0 %v379_v26, %s3459_s11  ;;  %v764_v25 = vmul.f32 %v2222_v60, %v763_v23  ;;  %v2257_v26 = vld [vmem:[%s2124_s8 + $0x38] sm:$0xff] }
  0x7d   : > { %399 = vrot.lane.b32.xlu1 %v394_v28, %s3461_s10  ;;  %397 = vrot.lane.b32.xlu0 %v393_v29, %s3461_s10  ;;  %v2260_v28 = vld [vmem:[%s2124_s8 + $0x30] sm:$0xff]  ;;  %v838_v29 = vmul.f32 %v2257_v26, %v836_v27 }
  0x7e   : > { %v837_v30 = vmul.f32 %v2260_v28, %v836_v27 }
  0x81   : > { %419 = vrot.lane.b32.xlu1 %v414_v31, %s3459_s11  ;;  %417 = vrot.lane.b32.xlu0 %v413_v32, %s3459_s11  ;;  %v850_v31 = vstv %s1685_s29  ;;  %s2335_s29 = sld [smem:[#allocation2 + $0x285]] }
  0x82   : > { %v852_v32 = vmul.f32 %v2257_v26, %v850_v31  ;;  %v851_v33 = vmul.f32 %v2260_v28, %v850_v31 }
  0x85   : > { %433 = vrot.lane.b32.xlu1 %v428_v34, %s3461_s10  ;;  %431 = vrot.lane.b32.xlu0 %v427_v35, %s3461_s10  ;;  %v2271_v34 = vld [vmem:[%s2124_s8 + $0x39] sm:$0xff]  ;;  %v870_v35 = vstv %s1687_s27  ;;  %s2342_s27 = sld [smem:[#allocation2 + $0x304]] }
  0x89   : > { %453 = vrot.lane.b32.xlu1 %v448_v37, %s3459_s11  ;;  %451 = vrot.lane.b32.xlu0 %v447_v38, %s3459_s11  ;;  %v872_v37 = vmul.f32 %v2271_v34, %v870_v35  ;;  %v871_v38 = vmul.f32 %v2274_v36, %v870_v35 }
  0x8d   : > { %467 = vrot.lane.b32.xlu1 %v462_v40, %s3461_s10  ;;  %465 = vrot.lane.b32.xlu0 %v461_v41, %s3461_s10  ;;  %v986_v40 = vmul.f32 %v2257_v26, %v984_v39  ;;  %v985_v41 = vmul.f32 %v2260_v28, %v984_v39 }
  0x91   : > { %540 = vrot.lane.b32.xlu1 %v535_v45, %s3459_s11  ;;  %538 = vrot.lane.b32.xlu0 %v534_v46, %s3459_s11  ;;  %v1000_v45 = vmul.f32 %v2257_v26, %v998_v43  ;;  %v999_v46 = vmul.f32 %v2260_v28, %v998_v43 }
  0x95   : > { %554 = vrot.lane.b32.xlu1 %v549_v48, %s3461_s10  ;;  %552 = vrot.lane.b32.xlu0 %v548_v49, %s3461_s10  ;;  %v2294_v48 = vld [vmem:[%s2124_s8 + $0x50] sm:$0xff]  ;;  %v1139_v49 = vstv %s1724_s7  ;;  %s2356_s7 = sld [smem:[#allocation2 + $0x207]] }
  0x96   : > { %v1140_v55 = vmul.f32 %v2297_v51, %v1139_v49 }
  0x99   : > { %574 = vrot.lane.b32.xlu1 %v569_v53, %s3459_s11  ;;  %572 = vrot.lane.b32.xlu0 %v568_v54, %s3459_s11  ;;  %v243_v53 = vmul.f32 %v242_v47, %v2127_v1  ;;  %v1141_v54 = vmul.f32 %v2294_v48, %v1139_v49 }
  0x9d   : > { %588 = vrot.lane.b32.xlu1 %v583_v56, %s3461_s10  ;;  %586 = vrot.lane.b32.xlu0 %v582_v57, %s3461_s10  ;;  %v274_v56 = vstv %s2286_s9  ;;  %v1153_v57 = vstv %s1725_s12  ;;  %s2358_s9 = sld [smem:[#allocation5 + $0x100]] }
  0x9e   : > { %v1154_v4 = vmul.f32 %v2297_v51, %v1153_v57  ;;  %v276_v12 = vmul.f32 %v274_v56, %v2139_v8  ;;  %s2360_s12 = sld [smem:[#allocation5 + $0x180]] }
  0xa1   : > { %608 = vrot.lane.b32.xlu1 %v603_v61, %s3459_s11  ;;  %606 = vrot.lane.b32.xlu0 %v602_v62, %s3459_s11 }
  0xa5   : > { %622 = vrot.lane.b32.xlu1 %v617_v0, %s3461_s10  ;;  %620 = vrot.lane.b32.xlu0 %v616_v3, %s3461_s10  ;;  %v275_v0 = vmul.f32 %v274_v56, %v2142_v10  ;;  %v1155_v3 = vmul.f32 %v2294_v48, %v1153_v57  ;;  %v374_v56 = vstv %s2333_s28  ;;  %v1032_v57 = vstv %s2335_s29  ;;  %s2390_s28 = sld [smem:[#allocation2 + $0x384]]  ;;  %s2392_s29 = sld [smem:[#allocation5 + $0x380]] }
  0xa9   : > { %688 = vrot.lane.b32.xlu1 %v683_v5, %s3459_s11  ;;  %686 = vrot.lane.b32.xlu0 %v682_v6, %s3459_s11  ;;  %v1287_v6 = vstv %s1741_s13  ;;  %s2362_s13 = sld [smem:[#allocation5 + $0x200]] }
  0xaa   : > { %v1288_v15 = vmul.f32 %v2297_v51, %v1287_v6 }
  0xad   : > { %702 = vrot.lane.b32.xlu1 %v697_v9, %s3461_s10  ;;  %700 = vrot.lane.b32.xlu0 %v696_v11, %s3461_s10 }
  0xb1   : > { %722 = vrot.lane.b32.xlu1 %v717_v13, %s3459_s11  ;;  %720 = vrot.lane.b32.xlu0 %v716_v14, %s3459_s11  ;;  %v1289_v14 = vmul.f32 %v2294_v48, %v1287_v6  ;;  %v2387_v6 = vld [vmem:[%s2124_s8 + $0x49] sm:$0xff] }
  0xb5   : > { %736 = vrot.lane.b32.xlu1 %v731_v17, %s3461_s10  ;;  %734 = vrot.lane.b32.xlu0 %v730_v19, %s3461_s10  ;;  %v884_v19 = vstv %s2305_s14  ;;  %s2368_s14 = sld [smem:[#allocation2 + $0x305]] }
  0xb6   : > { %v885_v27 = vmul.f32 %v2274_v36, %v884_v19 }
  0xb9   : > { %756 = vrot.lane.b32.xlu1 %v751_v21, %s3459_s11  ;;  %754 = vrot.lane.b32.xlu0 %v750_v22, %s3459_s11  ;;  %v308_v22 = vstv %s2307_s20  ;;  %s2370_s20 = sld [smem:[#allocation5 + $0x280]] }
  0xba   : > { %v309_v31 = vmul.f32 %v308_v22, %v2156_v18 }
  0xbd   : > { %770 = vrot.lane.b32.xlu1 %v765_v24, %s3461_s10  ;;  %768 = vrot.lane.b32.xlu0 %v764_v25, %s3461_s10  ;;  %v886_v25 = vmul.f32 %v2271_v34, %v884_v19  ;;  %v904_v19 = vstv %s2356_s7  ;;  %s2429_s7 = sld [smem:[#allocation2 + $0x287]] }
  0xc1   : > { %843 = vrot.lane.b32.xlu1 %v838_v29, %s3459_s11  ;;  %841 = vrot.lane.b32.xlu0 %v837_v30, %s3459_s11  ;;  %v310_v30 = vmul.f32 %v308_v22, %v2153_v16 }
  0xc5   : > { %857 = vrot.lane.b32.xlu1 %v852_v32, %s3461_s10  ;;  %855 = vrot.lane.b32.xlu0 %v851_v33, %s3461_s10  ;;  %v1018_v32 = vstv %s2315_s22  ;;  %s2376_s22 = sld [smem:[#allocation2 + $0x86]] }
  0xc6   : > { %v1020_v39 = vmul.f32 %v2271_v34, %v1018_v32 }
  0xc9   : > { %877 = vrot.lane.b32.xlu1 %v872_v37, %s3459_s11  ;;  %875 = vrot.lane.b32.xlu0 %v871_v38, %s3459_s11 }
  0xcd   : > { %991 = vrot.lane.b32.xlu1 %v986_v40, %s3459_s11  ;;  %989 = vrot.lane.b32.xlu0 %v985_v41, %s3459_s11  ;;  %v1019_v40 = vmul.f32 %v2274_v36, %v1018_v32  ;;  %v440_v32 = vstv %s2376_s22  ;;  %s2761_s22 = sld [smem:[#allocation5 + $0x103]] }
  0xd1   : > { %1005 = vrot.lane.b32.xlu1 %v1000_v45, %s3461_s10  ;;  %1003 = vrot.lane.b32.xlu0 %v999_v46, %s3461_s10  ;;  %v1301_v45 = vstv %s2323_s23  ;;  %s2378_s23 = sld [smem:[#allocation5 + $0x300]] }
  0xd3   : > { %v266_v59 = vpop.permute.xlu1 %265  ;;  %v252_v61 = vpop.permute.xlu0 %251 }
  0xd4   : > { %v257_v62 = vadd.f32 %v252_v61, %v243_v53 }
  0xd5   : > { %1146 = vrot.lane.b32.xlu1 %v1141_v54, %s3459_s11  ;;  %1144 = vrot.lane.b32.xlu0 %v1140_v55, %s3459_s11  ;;  %v1303_v54 = vmul.f32 %v2294_v48, %v1301_v45  ;;  %v1302_v55 = vmul.f32 %v2297_v51, %v1301_v45 }
  0xd6   : > { %v271_v5 = vadd.f32 %v266_v59, %v257_v62  ;;  %v376_v62 = vmul.f32 %v374_v56, %v2130_v2 }
  0xd7   : > { %v268_v7 = vpop.permute.xlu1 %267  ;;  %v254_v9 = vpop.permute.xlu0 %253 }
  0xd8   : > { %v258_v11 = vadd.f32 %v254_v9, %v244_v63  ;;  %v277_v13 = vadd.f32 %v275_v0, %v271_v5  ;;  %v1034_v63 = vmul.f32 %v2271_v34, %v1032_v57  ;;  %v375_v0 = vmul.f32 %v374_v56, %v2127_v1 }
  0xd9   : > { %1160 = vrot.lane.b32.xlu1 %v1155_v3, %s3461_s10  ;;  %1158 = vrot.lane.b32.xlu0 %v1154_v4, %s3461_s10  ;;  %v1033_v3 = vmul.f32 %v2274_v36, %v1032_v57  ;;  %v2383_v4 = vld [vmem:[%s2124_s8 + $0x51] sm:$0xff]  ;;  %v1173_v5 = vstv %s2342_s27  ;;  %s2404_s27 = sld [smem:[#allocation5 + $0x101]] }
  0xda   : > { %v272_v17 = vadd.f32 %v268_v7, %v258_v11  ;;  %v406_v7 = vstv %s2344_s30  ;;  %v1175_v1 = vmul.f32 %v2383_v4, %v1173_v5  ;;  %v1174_v11 = vmul.f32 %v2387_v6, %v1173_v5  ;;  %s2406_s30 = sld [smem:[#allocation5 + $0x181]] }
  0xdb   : > { %v288_v20 = vpop.permute.xlu1 %287  ;;  %v286_v21 = vpop.permute.xlu0 %285  ;;  %v498_v5 = vstv %s2414_s2  ;;  %s2643_s2 = sld [smem:[#allocation5 + $0x2]] }
  0xdc   : > { %v278_v23 = vadd.f32 %v276_v12, %v272_v17  ;;  %v291_v24 = vadd.f32 %v286_v21, %v277_v13  ;;  %v408_v12 = vmul.f32 %v406_v7, %v2139_v8  ;;  %v2411_v17 = vld [vmem:[%s2124_s8 + $0x3a] sm:$0xff]  ;;  %v342_v8 = vstv %s2348_s5  ;;  %s2664_s5 = sld [smem:[#allocation2 + $0x388]] }
  0xdd   : > { %1294 = vrot.lane.b32.xlu1 %v1289_v14, %s3459_s11  ;;  %1292 = vrot.lane.b32.xlu0 %v1288_v15, %s3459_s11  ;;  %v407_v15 = vmul.f32 %v406_v7, %v2142_v10  ;;  %v350_v10 = vstv %s2358_s9  ;;  %v504_v7 = vstv %s2416_s3  ;;  %s2645_s3 = sld [smem:[#allocation5 + $0x82]] }
  0xde   : > { %v292_v29 = vadd.f32 %v288_v20, %v278_v23  ;;  %v346_v20 = vstv %s2352_s6  ;;  %v2421_v23 = vld [vmem:[%s2124_s8 + $0x32] sm:$0xff]  ;;  %s2666_s6 = sld [smem:[#allocation5 + $0x282]] }
  0xdf   : > { %v302_v33 = vpop.permute.xlu1 %301  ;;  %v300_v35 = vpop.permute.xlu0 %299  ;;  %s2668_s9 = sld [smem:[#allocation5 + $0x302]] }
  0xe0   : > { %v306_v37 = vadd.f32 %v302_v33, %v292_v29  ;;  %v305_v38 = vadd.f32 %v300_v35, %v291_v24  ;;  %v354_v29 = vstv %s2360_s12  ;;  %s2672_s12 = sld [smem:[#allocation5 + $0x382]] }
  0xe1   : > { %891 = vrot.lane.b32.xlu1 %v886_v25, %s3461_s10  ;;  %889 = vrot.lane.b32.xlu0 %v885_v27, %s3461_s10  ;;  %v1187_v27 = vstv %s2368_s14  ;;  %s2445_s14 = sld [smem:[#allocation2 + $0x288]] }
  0xe2   : > { %v312_v41 = vadd.f32 %v310_v30, %v306_v37  ;;  %v311_v43 = vadd.f32 %v309_v31, %v305_v38  ;;  %v358_v30 = vstv %s2362_s13  ;;  %v906_v31 = vmul.f32 %v2411_v17, %v904_v19  ;;  %s2676_s13 = sld [smem:[#allocation2 + $0x183]] }
  0xe3   : > { %v322_v46 = vpop.permute.xlu1 %321  ;;  %v320_v47 = vpop.permute.xlu0 %319  ;;  %v905_v37 = vmul.f32 %v2421_v23, %v904_v19  ;;  %v1321_v38 = vstv %s2390_s28  ;;  %v561_v19 = vstv %s2440_s18  ;;  %s2588_s18 = sld [smem:[#allocation2 + $0x106]]  ;;  %s2765_s28 = sld [smem:[#allocation2 + $0x200]] }
  0xe4   : > { %v326_v49 = vadd.f32 %v322_v46, %v312_v41  ;;  %v325_v53 = vadd.f32 %v320_v47, %v311_v43  ;;  %v370_v41 = vstv %s2392_s29  ;;  %v1189_v46 = vmul.f32 %v2383_v4, %v1187_v27  ;;  %s2767_s29 = sld [smem:[#allocation5 + $0x203]] }
  0xe5   : > { %1025 = vrot.lane.b32.xlu1 %v1020_v39, %s3459_s11  ;;  %1023 = vrot.lane.b32.xlu0 %v1019_v40, %s3459_s11  ;;  %s2394_s11 = sld [smem:[#allocation2 + $0x208]]  ;;  %v362_v39 = vstv %s2370_s20  ;;  %v366_v40 = vstv %s2378_s23  ;;  %v1323_v56 = vmul.f32 %v2383_v4, %v1321_v38  ;;  %s2759_s20 = sld [smem:[#allocation5 + $0x83]] }
  0xe6   : > { %s2763_s23 = sld [smem:[#allocation5 + $0x183]] }
  0xe7   : > { %v336_v59 = vpop.permute.xlu1 %335  ;;  %v334_v61 = vpop.permute.xlu0 %333 }
  0xe8   : > { %v2364_v48 = vadd.f32 %v336_v59, %v326_v49  ;;  %v2366_v51 = vadd.f32 %v334_v61, %v325_v53  ;;  %v1188_v53 = vmul.f32 %v2387_v6, %v1187_v27  ;;  %v480_v59 = vstv %s2398_s0  ;;  %s2638_s0 = sld [smem:[#allocation2 + $0x387]] }
  0xe9   : > { %1308 = vrot.lane.b32.xlu1 %v1303_v54, %s3461_s10  ;;  %1306 = vrot.lane.b32.xlu0 %v1302_v55, %s3461_s10  ;;  %s2396_s10 = sld [smem:[#allocation5 + $0x1]]  ;;  %v442_v54 = vmul.f32 %v440_v32, %v2153_v16  ;;  %v441_v55 = vmul.f32 %v440_v32, %v2156_v18  ;;  %v1322_v61 = vmul.f32 %v2387_v6, %v1321_v38  ;;  %v3470_v18 = vstv %s2423_s24 }
  0xeb   : > { %v386_v2 = vpop.permute.xlu1 %385  ;;  %v384_v9 = vpop.permute.xlu0 %383  ;;  %v918_v16 = vstv %s2394_s11  ;;  %s2662_s11 = sld [smem:[#allocation5 + $0x202]] }
  0xec   : > { %v390_v13 = vadd.f32 %v386_v2, %v376_v62  ;;  %v389_v14 = vadd.f32 %v384_v9, %v375_v0  ;;  %v486_v62 = vstv %s2404_s27  ;;  %v529_v2 = vstv %s2425_s17  ;;  %s2561_s17 = sld [smem:[#allocation2 + $0x307]]  ;;  %s2769_s27 = sld [smem:[#allocation5 + $0x283]] }
  0xed   : > { %1039 = vrot.lane.b32.xlu1 %v1034_v63, %s3513_s1  ;;  %1037 = vrot.lane.b32.xlu0 %v1033_v3, %s3513_s1  ;;  %v492_v63 = vstv %s2406_s30  ;;  %v2480_v32 = vmul.f32 %v2194_v44, %v529_v2  ;;  %s2773_s30 = sld [smem:[#allocation5 + $0x303]] }
  0xef   : > { %v400_v21 = vpop.permute.xlu1 %399  ;;  %v398_v22 = vpop.permute.xlu0 %397  ;;  %v474_v57 = vstv %s2396_s10  ;;  %s2655_s10 = sld [smem:[#allocation2 + $0x180]] }
  0xf0   : > { %v404_v24 = vadd.f32 %v400_v21, %v390_v13  ;;  %v403_v25 = vadd.f32 %v398_v22, %v389_v14  ;;  %v3471_v13 = vstv %s2438_s15  ;;  %v920_v14 = vmul.f32 %v2411_v17, %v918_v16 }
  0xf1   : > { %1180 = vrot.lane.b32.xlu1 %v1175_v1, %s3514_s26  ;;  %1178 = vrot.lane.b32.xlu0 %v1174_v11, %s3514_s26  ;;  %v1052_v11 = vstv %s2429_s7  ;;  %s2775_s7 = sld [smem:[#allocation5 + $0x383]] }
  0xf2   : > { %v410_v33 = vadd.f32 %v408_v12, %v404_v24  ;;  %v409_v35 = vadd.f32 %v407_v15, %v403_v25  ;;  %v1335_v12 = vstv %s2431_s21  ;;  %v919_v15 = vmul.f32 %v2421_v23, %v918_v16  ;;  %s2599_s21 = sld [smem:[#allocation2 + $0x308]] }
  0xf3   : > { %v420_v43 = vpop.permute.xlu1 %419  ;;  %v418_v45 = vpop.permute.xlu0 %417  ;;  %v2476_v24 = vmul.f32 %v2191_v42, %v529_v2  ;;  %v3469_v25 = vstv %s2445_s14  ;;  %v356_v16 = vmul.f32 %v354_v29, %v2364_v48  ;;  %v372_v2 = vmul.f32 %v370_v41, %v2364_v48 }
  0xf4   : > { %v424_v47 = vadd.f32 %v420_v43, %v410_v33  ;;  %v423_v49 = vadd.f32 %v418_v45, %v409_v35  ;;  %v1054_v33 = vmul.f32 %v2411_v17, %v1052_v11  ;;  %v1053_v35 = vmul.f32 %v2421_v23, %v1052_v11 }
  0xf5   : > { %911 = vrot.lane.b32.xlu1 %v906_v31, %s3514_s26  ;;  %909 = vrot.lane.b32.xlu0 %v905_v37, %s3514_s26  ;;  %v2485_v37 = vmul.f32 %v2383_v4, %v1335_v12  ;;  %v2488_v45 = vmul.f32 %v2387_v6, %v1335_v12 }
  0xf7   : > { %v434_v0 = vpop.permute.xlu1 %433  ;;  %v432_v3 = vpop.permute.xlu0 %431 }
  0xf8   : > { %v438_v9 = vadd.f32 %v434_v0, %v424_v47  ;;  %v437_v1 = vadd.f32 %v432_v3, %v423_v49  ;;  %v344_v47 = vmul.f32 %v342_v8, %v2364_v48  ;;  %v348_v49 = vmul.f32 %v346_v20, %v2364_v48 }
  0xf9   : > { %1194 = vrot.lane.b32.xlu1 %v1189_v46, %s3513_s1  ;;  %1192 = vrot.lane.b32.xlu0 %v1188_v53, %s3513_s1  ;;  %v2491_v46 = vmul.f32 %v2205_v50, %v561_v19  ;;  %v2501_v53 = vmul.f32 %v2208_v52, %v561_v19  ;;  %v360_v0 = vmul.f32 %v358_v30, %v2364_v48 }
  0xfa   : > { %v444_v21 = vadd.f32 %v442_v54, %v438_v9  ;;  %v443_v22 = vadd.f32 %v441_v55, %v437_v1  ;;  %v2506_v54 = vmul.f32 %v2411_v17, %v3469_v25  ;;  %v352_v55 = vmul.f32 %v350_v10, %v2364_v48 }
  0xfb   : > { %v454_v27 = vpop.permute.xlu1 %453  ;;  %v452_v31 = vpop.permute.xlu0 %451  ;;  %v368_v3 = vmul.f32 %v366_v40, %v2364_v48  ;;  %v343_v9 = vmul.f32 %v342_v8, %v2366_v51  ;;  %v347_v1 = vmul.f32 %v346_v20, %v2366_v51  ;;  %v355_v19 = vmul.f32 %v354_v29, %v2366_v51 }
  0xfc   : > { %v458_v38 = vadd.f32 %v454_v27, %v444_v21  ;;  %v457_v43 = vadd.f32 %v452_v31, %v443_v22  ;;  %v359_v8 = vmul.f32 %v358_v30, %v2366_v51  ;;  %v363_v20 = vmul.f32 %v362_v39, %v2366_v51 }
  0xfd   : > { %1328 = vrot.lane.b32.xlu1 %v1323_v56, %s3514_s26  ;;  %v364_v56 = vmul.f32 %v362_v39, %v2364_v48  ;;  %1326 = vrot.lane.b32.xlu0 %v1322_v61, %s3514_s26  ;;  %v351_v61 = vmul.f32 %v350_v10, %v2366_v51  ;;  %v367_v22 = vmul.f32 %v366_v40, %v2366_v51 }
  0xfe   : > { %v371_v10 = vmul.f32 %v370_v41, %v2366_v51 }
  0xff   : > { %v468_v11 = vpop.permute.xlu1 %467  ;;  %v466_v12 = vpop.permute.xlu0 %465 }
 0x100   : > { %v472_v48 = vadd.f32 %v468_v11, %v458_v38  ;;  %v471_v21 = vadd.f32 %v466_v12, %v457_v43 }
 0x101   : > { %925 = vrot.lane.b32.xlu1 %v920_v14, %s3513_s1  ;;  %923 = vrot.lane.b32.xlu0 %v919_v15, %s3513_s1 }
 0x102   : > { %v476_v29 = vmul.f32 %v474_v57, %v472_v48  ;;  %v482_v27 = vmul.f32 %v480_v59, %v472_v48  ;;  %v488_v31 = vmul.f32 %v486_v62, %v472_v48  ;;  %v494_v38 = vmul.f32 %v492_v63, %v472_v48 }
 0x103   : > { %v500_v30 = vmul.f32 %v498_v5, %v472_v48  ;;  %v506_v39 = vmul.f32 %v504_v7, %v472_v48  ;;  %v512_v51 = vmul.f32 %v3470_v18, %v472_v48  ;;  %v518_v40 = vmul.f32 %v3471_v13, %v472_v48  ;;  %v541_v41 = vpop.permute.xlu1 %540  ;;  %v539_v14 = vpop.permute.xlu0 %538 }
 0x104   : > { %v2571_v43 = vadd.f32 %v476_v29, %v344_v47  ;;  %v2573_v15 = vadd.f32 %v482_v27, %v348_v49  ;;  %v2575_v11 = vadd.f32 %v488_v31, %v352_v55  ;;  %v2577_v12 = vadd.f32 %v494_v38, %v356_v16 }
 0x105   : > { %v2579_v25 = vadd.f32 %v500_v30, %v360_v0  ;;  %v2581_v18 = vadd.f32 %v506_v39, %v364_v56  ;;  %v2583_v48 = vadd.f32 %v512_v51, %v368_v3  ;;  %v2585_v13 = vadd.f32 %v518_v40, %v372_v2  ;;  %1059 = vrot.lane.b32.xlu1 %v1054_v33, %s3514_s26 }
 0x106   : > { %v475_v47 = vmul.f32 %v474_v57, %v471_v21  ;;  %v481_v49 = vmul.f32 %v480_v59, %v471_v21  ;;  %v487_v55 = vmul.f32 %v486_v62, %v471_v21  ;;  %v493_v16 = vmul.f32 %v492_v63, %v471_v21  ;;  %1057 = vrot.lane.b32.xlu0 %v1053_v35, %s3514_s26 }
 0x107   : > { %v499_v0 = vmul.f32 %v498_v5, %v471_v21  ;;  %v505_v56 = vmul.f32 %v504_v7, %v471_v21  ;;  %v3515_v3 = vstv %s2423_s24  ;;  %v3516_v2 = vstv %s2438_s15  ;;  %v555_v57 = vpop.permute.xlu1 %554  ;;  %v553_v59 = vpop.permute.xlu0 %552  ;;  %s2647_s15 = sld [smem:[#allocation5 + $0x102]] }
 0x108   : > { %v511_v33 = vmul.f32 %v3515_v3, %v471_v21  ;;  %v517_v29 = vmul.f32 %v3516_v2, %v471_v21  ;;  %v2609_v62 = vadd.f32 %v475_v47, %v343_v9  ;;  %v2611_v63 = vadd.f32 %v481_v49, %v347_v1  ;;  %s2653_s24 = sld [smem:[#allocation5 + $0x182]] }
 0x109   : > { %v2613_v35 = vadd.f32 %v487_v55, %v351_v61  ;;  %v2615_v27 = vadd.f32 %v493_v16, %v355_v19  ;;  %v2617_v5 = vadd.f32 %v499_v0, %v359_v8  ;;  %v2619_v7 = vadd.f32 %v505_v56, %v363_v20  ;;  %1342 = vrot.lane.b32.xlu1 %v2485_v37, %s3513_s1  ;;  %v2635_v8 = vld [vmem:[%s2124_s8 + $0x52] sm:$0xff]  ;;  %v2641_v37 = vld [vmem:[%s2124_s8 + $0x4a] sm:$0xff] }
 0x10a   : > { %v2621_v31 = vadd.f32 %v511_v33, %v367_v22  ;;  %v2623_v21 = vadd.f32 %v517_v29, %v371_v10  ;;  %v545_v9 = vadd.f32 %v541_v41, %v2476_v24  ;;  %v544_v1 = vadd.f32 %v539_v14, %v2480_v32  ;;  %1340 = vrot.lane.b32.xlu0 %v2488_v45, %s3513_s1 }
 0x10b   : > { %v3517_v61 = vstv %s2445_s14  ;;  %v1207_v20 = vstv %s2561_s17  ;;  %v575_v22 = vpop.permute.xlu1 %574  ;;  %v573_v10 = vpop.permute.xlu0 %572  ;;  %v595_v38 = vstv %s2588_s18  ;;  %v1221_v40 = vstv %s2599_s21  ;;  %s2777_s14 = sld [smem:[#allocation2 + $0x203]]  ;;  %s2869_s17 = sld [smem:[#allocation2 + $0x280]] }
 0x10c   : > { %v1067_v19 = vmul.f32 %v2421_v23, %v3517_v61  ;;  %v559_v24 = vadd.f32 %v555_v57, %v545_v9  ;;  %v558_v32 = vadd.f32 %v553_v59, %v544_v1  ;;  %v1209_v45 = vmul.f32 %v2635_v8, %v1207_v20  ;;  %s2871_s18 = sld [smem:[#allocation2 + $0x283]]  ;;  %s2877_s21 = sld [smem:[#allocation2 + $0x300]] }
 0x10d   : > { %1073 = vrot.lane.b32.xlu1 %v2506_v54, %s3513_s1  ;;  %v1208_v51 = vmul.f32 %v2641_v37, %v1207_v20  ;;  %v596_v47 = vmul.f32 %v2222_v60, %v595_v38  ;;  %v1223_v49 = vmul.f32 %v2635_v8, %v1221_v40  ;;  %v1222_v0 = vmul.f32 %v2641_v37, %v1221_v40 }
 0x10e   : > { %v565_v30 = vadd.f32 %v2491_v46, %v559_v24  ;;  %v564_v39 = vadd.f32 %v2501_v53, %v558_v32  ;;  %1071 = vrot.lane.b32.xlu0 %v1067_v19, %s3513_s1  ;;  %v597_v53 = vmul.f32 %v2219_v58, %v595_v38  ;;  %v1355_v56 = vstv %s2638_s0  ;;  %s2879_s0 = sld [smem:[#allocation2 + $0x380]] }
 0x10f   : > { %v589_v54 = vpop.permute.xlu1 %588  ;;  %v587_v41 = vpop.permute.xlu0 %586  ;;  %v629_v57 = vstv %s2643_s2  ;;  %v635_v59 = vstv %s2645_s3  ;;  %v641_v9 = vstv %s2647_s15  ;;  %v1357_v1 = vmul.f32 %v2635_v8, %v1355_v56  ;;  %s2881_s2 = sld [smem:[#allocation2 + $0x303]]  ;;  %s2883_s3 = sld [smem:[#allocation2 + $0x206]] }
 0x110   : > { %v579_v14 = vadd.f32 %v575_v22, %v565_v30  ;;  %v578_v46 = vadd.f32 %v573_v10, %v564_v39  ;;  %v677_v61 = vstv %s2655_s10  ;;  %v1356_v22 = vmul.f32 %v2641_v37, %v1355_v56  ;;  %s2885_s15 = sld [smem:[#allocation2 + $0x383]]  ;;  %s2893_s10 = sld [smem:[#allocation2 + $0x306]] }
 0x111   : > { %1214 = vrot.lane.b32.xlu1 %v1209_v45, %s3514_s26  ;;  %v1369_v10 = vstv %s2664_s5  ;;  %v647_v24 = vstv %s2653_s24  ;;  %v653_v32 = vstv %s2662_s11  ;;  %s2891_s24 = sld [smem:[#allocation2 + $0x286]]  ;;  %s2895_s11 = sld [smem:[#allocation5 + $0x4]] }
 0x112   : > { %v593_v55 = vadd.f32 %v589_v54, %v579_v14  ;;  %v592_v16 = vadd.f32 %v587_v41, %v578_v46  ;;  %1212 = vrot.lane.b32.xlu0 %v1208_v51, %s3514_s26  ;;  %v659_v45 = vstv %s2666_s6  ;;  %v665_v38 = vstv %s2668_s9  ;;  %s2897_s5 = sld [smem:[#allocation5 + $0x84]] }
 0x113   : > { %v609_v3 = vpop.permute.xlu1 %608  ;;  %v607_v33 = vpop.permute.xlu0 %606  ;;  %v671_v51 = vstv %s2672_s12  ;;  %v679_v41 = vmul.f32 %v2191_v42, %v677_v61  ;;  %v678_v14 = vmul.f32 %v2194_v44, %v677_v61  ;;  %v1371_v46 = vmul.f32 %v2635_v8, %v1369_v10  ;;  %s2899_s6 = sld [smem:[#allocation5 + $0x104]] }
 0x114   : > { %v599_v2 = vadd.f32 %v597_v53, %v593_v55  ;;  %v598_v29 = vadd.f32 %v596_v47, %v592_v16  ;;  %v1370_v53 = vmul.f32 %v2641_v37, %v1369_v10  ;;  %v709_v47 = vstv %s2676_s13  ;;  %s2901_s9 = sld [smem:[#allocation5 + $0x184]] }
 0x115   : > { %1228 = vrot.lane.b32.xlu1 %v1223_v49, %s3513_s1  ;;  %s2904_s12 = sld [smem:[#allocation5 + $0x204]] }
 0x116   : > { %v613_v19 = vadd.f32 %v609_v3, %v599_v2  ;;  %v612_v20 = vadd.f32 %v607_v33, %v598_v29  ;;  %1226 = vrot.lane.b32.xlu0 %v1222_v0, %s3513_s1  ;;  %s2906_s13 = sld [smem:[#allocation5 + $0x284]] }
 0x117   : > { %v623_v30 = vpop.permute.xlu1 %622  ;;  %v621_v39 = vpop.permute.xlu0 %620 }
 0x118   : > { %v627_v40 = vadd.f32 %v623_v30, %v613_v19  ;;  %v626_v54 = vadd.f32 %v621_v39, %v612_v20 }
 0x119   : > { %1362 = vrot.lane.b32.xlu1 %v1357_v1, %s3514_s26 }
 0x11a   : > { %v631_v49 = vmul.f32 %v629_v57, %v627_v40  ;;  %v637_v55 = vmul.f32 %v635_v59, %v627_v40  ;;  %v643_v16 = vmul.f32 %v641_v9, %v627_v40  ;;  %v649_v0 = vmul.f32 %v647_v24, %v627_v40  ;;  %1360 = vrot.lane.b32.xlu0 %v1356_v22, %s3514_s26  ;;  %s2727_s26 = sld [smem:[#allocation2 + $0x186]] }
 0x11b   : > { %v655_v56 = vmul.f32 %v653_v32, %v627_v40  ;;  %v661_v3 = vmul.f32 %v659_v45, %v627_v40  ;;  %v667_v33 = vmul.f32 %v665_v38, %v627_v40  ;;  %v673_v2 = vmul.f32 %v671_v51, %v627_v40  ;;  %v689_v42 = vpop.permute.xlu1 %688  ;;  %v687_v29 = vpop.permute.xlu0 %686 }
 0x11c   : > { %v2703_v1 = vadd.f32 %v631_v49, %v2571_v43  ;;  %v2706_v44 = vadd.f32 %v637_v55, %v2573_v15  ;;  %v2709_v61 = vadd.f32 %v643_v16, %v2575_v11  ;;  %v2712_v19 = vadd.f32 %v649_v0, %v2577_v12 }
 0x11d   : > { %v2715_v20 = vadd.f32 %v655_v56, %v2579_v25  ;;  %v2718_v22 = vadd.f32 %v661_v3, %v2581_v18  ;;  %v2721_v10 = vadd.f32 %v667_v33, %v2583_v48  ;;  %v2724_v43 = vadd.f32 %v673_v2, %v2585_v13  ;;  %1376 = vrot.lane.b32.xlu1 %v1371_v46, %s3513_s1 }
 0x11e   : > { %v630_v15 = vmul.f32 %v629_v57, %v626_v54  ;;  %v636_v11 = vmul.f32 %v635_v59, %v626_v54  ;;  %v642_v12 = vmul.f32 %v641_v9, %v626_v54  ;;  %v648_v30 = vmul.f32 %v647_v24, %v626_v54  ;;  %1374 = vrot.lane.b32.xlu0 %v1370_v53, %s3513_s1  ;;  %s2756_s1 = sld [smem:[#allocation5 + $0x3]] }
 0x11f   : > { %v654_v25 = vmul.f32 %v653_v32, %v626_v54  ;;  %v660_v39 = vmul.f32 %v659_v45, %v626_v54  ;;  %v666_v18 = vmul.f32 %v665_v38, %v626_v54  ;;  %v672_v40 = vmul.f32 %v671_v51, %v626_v54  ;;  %v703_v49 = vpop.permute.xlu1 %702  ;;  %v701_v48 = vpop.permute.xlu0 %700 }
 0x120   : > { %v2731_v55 = vadd.f32 %v630_v15, %v2609_v62  ;;  %v2734_v13 = vadd.f32 %v636_v11, %v2611_v63  ;;  %v2737_v57 = vadd.f32 %v642_v12, %v2613_v35  ;;  %v2740_v59 = vadd.f32 %v648_v30, %v2615_v27 }
 0x121   : > { %v2743_v9 = vadd.f32 %v654_v25, %v2617_v5  ;;  %v2746_v24 = vadd.f32 %v660_v39, %v2619_v7  ;;  %v2749_v32 = vadd.f32 %v666_v18, %v2621_v31  ;;  %v2752_v62 = vadd.f32 %v672_v40, %v2623_v21 }
 0x122   : > { %v693_v63 = vadd.f32 %v689_v42, %v679_v41  ;;  %v692_v45 = vadd.f32 %v687_v29, %v678_v14  ;;  %v711_v35 = vmul.f32 %v2205_v50, %v709_v47  ;;  %v710_v38 = vmul.f32 %v2208_v52, %v709_v47 }
 0x123   : > { %v723_v27 = vpop.permute.xlu1 %722  ;;  %v721_v51 = vpop.permute.xlu0 %720  ;;  %v743_v7 = vstv %s2727_s26  ;;  %v783_v42 = vstv %s2759_s20  ;;  %v832_v29 = vstv %s2765_s28  ;;  %v789_v15 = vstv %s2761_s22  ;;  %s2911_s26 = sld [smem:[#allocation5 + $0x304]]  ;;  %s2918_s20 = sld [smem:[#allocation5 + $0x5]] }
 0x124   : > { %v707_v54 = vadd.f32 %v703_v49, %v693_v63  ;;  %v706_v5 = vadd.f32 %v701_v48, %v692_v45  ;;  %v745_v46 = vmul.f32 %v2219_v58, %v743_v7  ;;  %v744_v53 = vmul.f32 %v2222_v60, %v743_v7  ;;  %s2920_s22 = sld [smem:[#allocation5 + $0x85]]  ;;  %s2927_s28 = sld [smem:[#allocation2 + $0x386]] }
 0x125   : > { %v777_v33 = vstv %s2756_s1  ;;  %v795_v11 = vstv %s2763_s23  ;;  %v801_v12 = vstv %s2767_s29  ;;  %v807_v30 = vstv %s2769_s27  ;;  %s2913_s1 = sld [smem:[#allocation5 + $0x384]]  ;;  %s2925_s23 = sld [smem:[#allocation5 + $0x105]] }
 0x126   : > { %v713_v31 = vadd.f32 %v711_v35, %v707_v54  ;;  %v712_v21 = vadd.f32 %v710_v38, %v706_v5  ;;  %v813_v18 = vstv %s2773_s30  ;;  %v819_v40 = vstv %s2775_s7  ;;  %s2935_s29 = sld [smem:[#allocation5 + $0x185]] }
 0x127   : > { %v737_v50 = vpop.permute.xlu1 %736  ;;  %v735_v41 = vpop.permute.xlu0 %734  ;;  %v834_v63 = vmul.f32 %v2257_v26, %v832_v29  ;;  %v833_v45 = vmul.f32 %v2260_v28, %v832_v29  ;;  %v864_v35 = vstv %s2777_s14  ;;  %s2937_s27 = sld [smem:[#allocation5 + $0x205]] }
 0x128   : > { %v727_v52 = vadd.f32 %v723_v27, %v713_v31  ;;  %v726_v14 = vadd.f32 %v721_v51, %v712_v21  ;;  %s2948_s30 = sld [smem:[#allocation5 + $0x285]] }
 0x129   : > { %s2950_s7 = sld [smem:[#allocation5 + $0x305]] }
 0x12a   : > { %v741_v47 = vadd.f32 %v737_v50, %v727_v52  ;;  %v740_v16 = vadd.f32 %v735_v41, %v726_v14  ;;  %s2966_s14 = sld [smem:[#allocation5 + $0x385]] }
 0x12b   : > { %v757_v0 = vpop.permute.xlu1 %756  ;;  %v755_v56 = vpop.permute.xlu0 %754 }
 0x12c   : > { %v747_v3 = vadd.f32 %v745_v46, %v741_v47  ;;  %v746_v58 = vadd.f32 %v744_v53, %v740_v16 }
 0x12e   : > { %v761_v2 = vadd.f32 %v757_v0, %v747_v3  ;;  %v760_v60 = vadd.f32 %v755_v56, %v746_v58 }
 0x12f   : > { %v771_v25 = vpop.permute.xlu1 %770  ;;  %v769_v39 = vpop.permute.xlu0 %768 }
 0x130   : > { %v775_v49 = vadd.f32 %v771_v25, %v761_v2  ;;  %v774_v48 = vadd.f32 %v769_v39, %v760_v60 }
 0x132   : > { %v779_v38 = vmul.f32 %v777_v33, %v775_v49  ;;  %v785_v27 = vmul.f32 %v783_v42, %v775_v49  ;;  %v791_v51 = vmul.f32 %v789_v15, %v775_v49  ;;  %v797_v54 = vmul.f32 %v795_v11, %v775_v49 }
 0x133   : > { %v803_v5 = vmul.f32 %v801_v12, %v775_v49  ;;  %v809_v7 = vmul.f32 %v807_v30, %v775_v49  ;;  %v815_v31 = vmul.f32 %v813_v18, %v775_v49  ;;  %v821_v21 = vmul.f32 %v819_v40, %v775_v49  ;;  %v844_v50 = vpop.permute.xlu1 %843  ;;  %v842_v41 = vpop.permute.xlu0 %841 }
 0x134   : > { %v2792_v52 = vadd.f32 %v779_v38, %v2703_v1  ;;  %v2795_v14 = vadd.f32 %v785_v27, %v2706_v44  ;;  %v2798_v26 = vadd.f32 %v791_v51, %v2709_v61  ;;  %v2801_v28 = vadd.f32 %v797_v54, %v2712_v19 }
 0x135   : > { %v2804_v46 = vadd.f32 %v803_v5, %v2715_v20  ;;  %v2807_v53 = vadd.f32 %v809_v7, %v2718_v22  ;;  %v2810_v47 = vadd.f32 %v815_v31, %v2721_v10  ;;  %v2813_v1 = vadd.f32 %v821_v21, %v2724_v43 }
 0x136   : > { %v778_v44 = vmul.f32 %v777_v33, %v774_v48  ;;  %v784_v16 = vmul.f32 %v783_v42, %v774_v48  ;;  %v790_v0 = vmul.f32 %v789_v15, %v774_v48  ;;  %v796_v61 = vmul.f32 %v795_v11, %v774_v48 }
 0x137   : > { %v802_v56 = vmul.f32 %v801_v12, %v774_v48  ;;  %v808_v3 = vmul.f32 %v807_v30, %v774_v48  ;;  %v814_v19 = vmul.f32 %v813_v18, %v774_v48  ;;  %v820_v58 = vmul.f32 %v819_v40, %v774_v48  ;;  %v858_v2 = vpop.permute.xlu1 %857  ;;  %v856_v20 = vpop.permute.xlu0 %855 }
 0x138   : > { %v2816_v60 = vadd.f32 %v778_v44, %v2731_v55  ;;  %v2819_v22 = vadd.f32 %v784_v16, %v2734_v13  ;;  %v2822_v10 = vadd.f32 %v790_v0, %v2737_v57  ;;  %v2825_v43 = vadd.f32 %v796_v61, %v2740_v59  ;;  %v1859_v16 = vld [vmem:[%s2124_s8 + $0x38] sm:$0xff] }
 0x139   : > { %v2828_v33 = vadd.f32 %v802_v56, %v2743_v9  ;;  %v2831_v42 = vadd.f32 %v808_v3, %v2746_v24  ;;  %v2834_v29 = vadd.f32 %v814_v19, %v2749_v32  ;;  %v2837_v55 = vadd.f32 %v820_v58, %v2752_v62  ;;  %v1860_v3 = vld [vmem:[%s2124_s8 + $0x30] sm:$0xff]  ;;  %v1861_v58 = vld [vmem:[%s2124_s8 + $0x39] sm:$0xff] }
 0x13a   : > { %v848_v13 = vadd.f32 %v844_v50, %v834_v63  ;;  %v847_v15 = vadd.f32 %v842_v41, %v833_v45  ;;  %v866_v57 = vmul.f32 %v2271_v34, %v864_v35  ;;  %v865_v11 = vmul.f32 %v2274_v36, %v864_v35 }
 0x13b   : > { %v878_v59 = vpop.permute.xlu1 %877  ;;  %v876_v12 = vpop.permute.xlu0 %875  ;;  %v980_v31 = vstv %s2869_s17  ;;  %v1012_v21 = vstv %s2871_s18  ;;  %v1135_v41 = vstv %s2877_s21  ;;  %v1283_v61 = vstv %s2879_s0  ;;  %s2968_s17 = sld [smem:[#allocation5 + $0x6]] }
 0x13c   : > { %v862_v30 = vadd.f32 %v858_v2, %v848_v13  ;;  %v861_v9 = vadd.f32 %v856_v20, %v847_v15  ;;  %v982_v0 = vmul.f32 %v1859_v16, %v980_v31  ;;  %v1167_v56 = vstv %s2881_s2  ;;  %v1862_v15 = vld [vmem:[%s2124_s8 + $0x50] sm:$0xff]  ;;  %s2981_s18 = sld [smem:[#allocation5 + $0x106]] }
 0x13d   : > { %v981_v19 = vmul.f32 %v1860_v3, %v980_v31  ;;  %v2931_v2 = vmul.f32 %v1861_v58, %v1012_v21  ;;  %v898_v20 = vstv %s2883_s3  ;;  %v1315_v13 = vstv %s2885_s15  ;;  %s2995_s21 = sld [smem:[#allocation5 + $0x186]] }
 0x13e   : > { %v868_v25 = vadd.f32 %v866_v57, %v862_v30  ;;  %v867_v39 = vadd.f32 %v865_v11, %v861_v9  ;;  %v2940_v57 = vmul.f32 %v1862_v15, %v1135_v41  ;;  %v1863_v11 = vld [vmem:[%s2124_s8 + $0x31] sm:$0xff]  ;;  %v1046_v30 = vstv %s2891_s24  ;;  %s2997_s0 = sld [smem:[#allocation5 + $0x206]]  ;;  %s3015_s24 = sld [smem:[#allocation5 + $0x7]] }
 0x13f   : > { %v2841_v24 = vpop.permute.xlu1 %991  ;;  %v2843_v18 = vpop.permute.xlu0 %989  ;;  %v1201_v9 = vstv %s2893_s10  ;;  %v2956_v31 = vmul.f32 %v1862_v15, %v1283_v61  ;;  %v2959_v16 = vmul.f32 %v2383_v4, %v1167_v56  ;;  %v2962_v3 = vmul.f32 %v2387_v6, %v1167_v56  ;;  %s3005_s2 = sld [smem:[#allocation5 + $0x286]]  ;;  %s3021_s10 = sld [smem:[#allocation5 + $0x87]] }
 0x140   : > { %v2845_v32 = vadd.f32 %v878_v59, %v868_v25  ;;  %v2847_v62 = vadd.f32 %v876_v12, %v867_v39  ;;  %v2943_v59 = vmul.f32 %v1863_v11, %v1012_v21  ;;  %v1864_v25 = vld [vmem:[%s2124_s8 + $0x48] sm:$0xff]  ;;  %v2974_v15 = vmul.f32 %v2421_v23, %v898_v20  ;;  %s2979_s8 = sld [smem:[#allocation5 + $0x86]] }
 0x141   : > { %v2954_v39 = vmul.f32 %v1864_v25, %v1135_v41  ;;  %v2970_v58 = vmul.f32 %v1864_v25, %v1283_v61  ;;  %v900_v41 = vmul.f32 %v2411_v17, %v898_v20  ;;  %v2977_v11 = vmul.f32 %v2383_v4, %v1315_v13  ;;  %s3007_s3 = sld [smem:[#allocation5 + $0x306]] }
 0x142   : > { %v2984_v56 = vmul.f32 %v2387_v6, %v1315_v13  ;;  %v2987_v61 = vmul.f32 %v2411_v17, %v1046_v30  ;;  %v2990_v20 = vmul.f32 %v2421_v23, %v1046_v30  ;;  %v2993_v4 = vmul.f32 %v2635_v8, %v1201_v9  ;;  %s3013_s15 = sld [smem:[#allocation5 + $0x386]] }
 0x143   : > { %v2849_v40 = vpop.permute.xlu1 %1005  ;;  %v2851_v49 = vpop.permute.xlu0 %1003  ;;  %v996_v25 = vadd.f32 %v2841_v24, %v982_v0  ;;  %v995_v0 = vadd.f32 %v2843_v18, %v981_v19 }
 0x144   : > { %3519 = vst [vmem:[#allocation22_spill] sm:$0xff] %v2984_v56  ;;  %3520 = vst [vmem:[#allocation23_spill] sm:$0xff] %v2990_v20  ;;  %3523 = sst [smem:[#allocation26_spill]] %s3015_s24 }
 0x145   : > { %3521 = vst [vmem:[#allocation24_spill] sm:$0xff] %v2993_v4  ;;  %3524 = sst [smem:[#allocation27_spill]] %s3021_s10 }
 0x146   : > { %v1241_v30 = vstv %s2979_s8  ;;  %s3584_s8 = sld [smem:[#allocation19_spill]] }
 0x147   : > { %v2853_v34 = vpop.permute.xlu1 %1146  ;;  %v2855_v36 = vpop.permute.xlu0 %1144 }
 0x14b   : > { %v2857_v48 = vpop.permute.xlu1 %1160  ;;  %v2859_v63 = vpop.permute.xlu0 %1158 }
 0x14c   : > { %p3588_p2 = scmp.ne.s32.totalorder %s3584_s8, 0 }
 0x14f   : > { %v2861_v45 = vpop.permute.xlu1 %1294  ;;  %v2863_v35 = vpop.permute.xlu0 %1292 }
 0x150   : > { %v1299_v17 = vadd.f32 %v2861_v45, %v2956_v31 }
 0x153   : > { %v2865_v38 = vpop.permute.xlu1 %891  ;;  %v2867_v27 = vpop.permute.xlu0 %889 }
 0x154   : > { %v896_v4 = vadd.f32 %v2865_v38, %v2845_v32  ;;  %v895_v13 = vadd.f32 %v2867_v27, %v2847_v62  ;;  %v1235_v38 = vstv %s2968_s17 }
 0x156   : > { %v902_v27 = vadd.f32 %v900_v41, %v896_v4  ;;  %v1395_v41 = vstv %s3027_s25  ;;  %v1298_v4 = vadd.f32 %v2863_v35, %v2970_v58  ;;  %s3134_s25 = sld [smem:[#allocation5 + $0x387]] }
 0x157   : > { %v2873_v51 = vpop.permute.xlu1 %1025  ;;  %v2875_v54 = vpop.permute.xlu0 %1023 }
 0x15b   : > { %v2887_v5 = vpop.permute.xlu1 %1308  ;;  %v2889_v7 = vpop.permute.xlu0 %1306 }
 0x15c   : > { %v1313_v45 = vadd.f32 %v2887_v5, %v1299_v17  ;;  %v1312_v35 = vadd.f32 %v2889_v7, %v1298_v4  ;;  %v3533_v7 = vstv %s2911_s26 }
 0x15f   : > { %v2909_v50 = vpop.permute.xlu1 %1039  ;;  %v2916_v44 = vpop.permute.xlu0 %1037 }
 0x163   : > { %v2945_v12 = vpop.permute.xlu1 %1180  ;;  %v2964_v21 = vpop.permute.xlu0 %1178 }
 0x164   : > { %3518 = vst [vmem:[#allocation21_spill] sm:$0xff] %v2964_v21  ;;  %v3003_v21 = vmul.f32 %v2641_v37, %v1201_v9  ;;  %v1010_v9 = vadd.f32 %v2849_v40, %v996_v25  ;;  %v1009_v25 = vadd.f32 %v2851_v49, %v995_v0  ;;  %v1151_v40 = vadd.f32 %v2853_v34, %v2940_v57 }
 0x165   : > { %v1265_v0 = vstv %s3005_s2  ;;  %v1383_v34 = vstv %s3015_s24  ;;  %v1150_v49 = vadd.f32 %v2855_v36, %v2954_v39  ;;  %s3146_s24 = sld [smem:[#allocation7 + $0x1]] }
 0x166   : > { %3522 = vst [vmem:[#allocation25_spill] sm:$0xff] %v3003_v21  ;;  %v1349_v21 = vstv %s2927_s28  ;;  %s3035_s28 = sld [smem:[#allocation5 + $0x187]]  ;;  %v1016_v32 = vadd.f32 %v2931_v2, %v1010_v9  ;;  %v1165_v62 = vadd.f32 %v2857_v48, %v1151_v40  ;;  %v1277_v9 = vstv %s3013_s15 }
 0x167   : > { %v912_v6 = vpop.permute.xlu1 %911  ;;  %v910_v23 = vpop.permute.xlu0 %909  ;;  %v3043_v18 = vmul.f32 %v2635_v8, %v1349_v21  ;;  %v3046_v19 = vmul.f32 %v2641_v37, %v1349_v21  ;;  %v1247_v8 = vstv %s2981_s18  ;;  %v1015_v57 = vadd.f32 %v2943_v59, %v1009_v25 }
 0x168   : > { %v1030_v37 = vadd.f32 %v2873_v51, %v1016_v32  ;;  %v901_v51 = vadd.f32 %v2974_v15, %v895_v13  ;;  %v1389_v32 = vstv %s3021_s10  ;;  %v916_v48 = vadd.f32 %v912_v6, %v902_v27  ;;  %s3136_s10 = sld [smem:[#allocation7]] }
 0x169   : > { %v1029_v59 = vadd.f32 %v2875_v54, %v1015_v57  ;;  %v1164_v36 = vadd.f32 %v2859_v63, %v1150_v49  ;;  %v1171_v39 = vadd.f32 %v2959_v16, %v1165_v62  ;;  %v3527_v40 = vstv %s2895_s11 }
 0x16a   : > { %v1044_v20 = vadd.f32 %v2909_v50, %v1030_v37  ;;  %v915_v50 = vadd.f32 %v910_v23, %v901_v51  ;;  %v3528_v37 = vstv %s2897_s5  ;;  %v3529_v63 = vstv %s2899_s6  ;;  %s3160_s5 = sld [smem:[#allocation7 + $0x4]]  ;;  %s3174_s6 = sld [smem:[#allocation7 + $0x5]] }
 0x16b   : > { %v3030_v56 = vpop.permute.xlu1 %1194  ;;  %v3039_v24 = vpop.permute.xlu0 %1192  ;;  %v1043_v54 = vadd.f32 %v2916_v44, %v1029_v59  ;;  %v3530_v57 = vstv %s2901_s9  ;;  %v3531_v16 = vstv %s2904_s12  ;;  %v3532_v62 = vstv %s2906_s13  ;;  %s3188_s9 = sld [smem:[#allocation7 + $0x6]]  ;;  %s3190_s12 = sld [smem:[#allocation7 + $0x7]] }
 0x16c   : > { %3526 = sst [smem:[#allocation29_spill]] %s3035_s28  ;;  %v1401_v13 = vstv %s3035_s28  ;;  %v1050_v23 = vadd.f32 %v2987_v61, %v1044_v20  ;;  %v3534_v44 = vstv %s2913_s1  ;;  %s3108_s28 = sld [smem:[#allocation5 + $0x307]] }
 0x16d   : > { %s3569_s13 = sld [smem:[#allocation13_spill]] }
 0x16f   : > { %v3059_v21 = vpop.permute.xlu1 %1328  ;;  %v3065_v2 = vpop.permute.xlu0 %1326 }
 0x173   : > { %v926_v15 = vpop.permute.xlu1 %925  ;;  %v924_v6 = vpop.permute.xlu0 %923 }
 0x174   : > { %v930_v31 = vadd.f32 %v926_v15, %v916_v48  ;;  %v929_v58 = vadd.f32 %v924_v6, %v915_v50 }
 0x176   : > { %v934_v25 = vmul.f32 %v3527_v40, %v930_v31  ;;  %v940_v27 = vmul.f32 %v3528_v37, %v930_v31  ;;  %v946_v49 = vmul.f32 %v3529_v63, %v930_v31  ;;  %v952_v5 = vmul.f32 %v3530_v57, %v930_v31 }
 0x177   : > { %v958_v17 = vmul.f32 %v3531_v16, %v930_v31  ;;  %v964_v51 = vmul.f32 %v3532_v62, %v930_v31  ;;  %v970_v48 = vmul.f32 %v3533_v7, %v930_v31  ;;  %v976_v4 = vmul.f32 %v3534_v44, %v930_v31  ;;  %v1060_v61 = vpop.permute.xlu1 %1059 }
 0x178   : > { %v3111_v20 = vadd.f32 %v934_v25, %v2792_v52  ;;  %v3114_v59 = vadd.f32 %v940_v27, %v2795_v14  ;;  %v3117_v50 = vadd.f32 %v946_v49, %v2798_v26  ;;  %v3120_v15 = vadd.f32 %v952_v5, %v2801_v28  ;;  %v1058_v31 = vpop.permute.xlu0 %1057 }
 0x179   : > { %v3123_v6 = vadd.f32 %v958_v17, %v2804_v46  ;;  %v3126_v52 = vadd.f32 %v964_v51, %v2807_v53  ;;  %v3129_v14 = vadd.f32 %v970_v48, %v2810_v47  ;;  %v3132_v40 = vadd.f32 %v976_v4, %v2813_v1 }
 0x17a   : > { %v3535_v26 = vstv %s2895_s11  ;;  %v3536_v25 = vmov %v3528_v37  ;;  %v3537_v27 = vmov %v3529_v63  ;;  %v3538_v63 = vmov %v3530_v57  ;;  %s3158_s11 = sld [smem:[#allocation7 + $0x3]] }
 0x17b   : > { %v933_v28 = vmul.f32 %v3535_v26, %v929_v58  ;;  %v939_v37 = vmul.f32 %v3536_v25, %v929_v58  ;;  %v945_v46 = vmul.f32 %v3537_v27, %v929_v58  ;;  %v951_v49 = vmul.f32 %v3538_v63, %v929_v58  ;;  %v1343_v51 = vpop.permute.xlu1 %1342  ;;  %v3544_v63 = vld [vmem:[#allocation21_spill] sm:$0xff] }
 0x17c   : > { %v3539_v53 = vmov %v3531_v16  ;;  %v3540_v1 = vmov %v3532_v62  ;;  %v3541_v5 = vmov %v3533_v7  ;;  %v3542_v17 = vmov %v3534_v44 }
 0x17d   : > { %v957_v47 = vmul.f32 %v3539_v53, %v929_v58  ;;  %v963_v57 = vmul.f32 %v3540_v1, %v929_v58  ;;  %v969_v16 = vmul.f32 %v3541_v5, %v929_v58  ;;  %v975_v62 = vmul.f32 %v3542_v17, %v929_v58  ;;  %v1341_v58 = vpop.permute.xlu0 %1340 }
 0x17e   : > { %v3163_v7 = vadd.f32 %v933_v28, %v2816_v60  ;;  %v3166_v48 = vadd.f32 %v939_v37, %v2819_v22  ;;  %v3169_v44 = vadd.f32 %v945_v46, %v2822_v10  ;;  %v3172_v4 = vadd.f32 %v951_v49, %v2825_v43  ;;  %v3543_v37 = vld [vmem:[#allocation22_spill] sm:$0xff] }
 0x17f   : > { %v3177_v26 = vadd.f32 %v957_v47, %v2828_v33  ;;  %v3180_v60 = vadd.f32 %v963_v57, %v2831_v42  ;;  %v3183_v22 = vadd.f32 %v969_v16, %v2834_v29  ;;  %v3186_v10 = vadd.f32 %v975_v62, %v2837_v55  ;;  %v1074_v27 = vpop.permute.xlu1 %1073 }
 0x180   : > { %v1170_v43 = vadd.f32 %v2962_v3, %v1164_v36  ;;  %v1319_v28 = vadd.f32 %v2977_v11, %v1313_v45  ;;  %v1064_v33 = vadd.f32 %v1060_v61, %v1050_v23  ;;  %v1407_v25 = vstv %s3096_s4  ;;  %v3545_v36 = vld [vmem:[#allocation23_spill] sm:$0xff] }
 0x181   : > { %v1185_v42 = vadd.f32 %v2945_v12, %v1171_v39  ;;  %v1318_v29 = vadd.f32 %v3543_v37, %v1312_v35  ;;  %v1413_v55 = vstv %s3106_s19  ;;  %v1419_v46 = vstv %s3108_s28  ;;  %v1072_v23 = vpop.permute.xlu0 %1071 }
 0x182   : > { %v1184_v49 = vadd.f32 %v3544_v63, %v1170_v43  ;;  %v1333_v3 = vadd.f32 %v3059_v21, %v1319_v28  ;;  %v1049_v11 = vadd.f32 %v3545_v36, %v1043_v54  ;;  %v1078_v45 = vadd.f32 %v1074_v27, %v1064_v33  ;;  %v3552_v36 = vld [vmem:[#allocation25_spill] sm:$0xff] }
 0x183   : > { %v1199_v12 = vadd.f32 %v3030_v56, %v1185_v42  ;;  %v1332_v39 = vadd.f32 %v3065_v2, %v1318_v29  ;;  %v1425_v35 = vstv %s3134_s25  ;;  %v1431_v61 = vstv %s3136_s10  ;;  %v1215_v57 = vpop.permute.xlu1 %1214  ;;  %s3582_s25 = sld [smem:[#allocation34_spill]] }
 0x184   : > { %v1198_v53 = vadd.f32 %v3039_v24, %v1184_v49  ;;  %v1063_v47 = vadd.f32 %v1058_v31, %v1049_v11  ;;  %v1347_v21 = vadd.f32 %v1343_v51, %v1333_v3  ;;  %v1438_v54 = vstv %s3146_s24  ;;  %v3549_v51 = vld [vmem:[#allocation24_spill] sm:$0xff] }
 0x185   : > { %v1346_v1 = vadd.f32 %v1341_v58, %v1332_v39  ;;  %v1445_v5 = vstv %s3148_s16  ;;  %v3546_v2 = vstv %s2918_s20  ;;  %v3547_v62 = vstv %s2920_s22  ;;  %v1213_v33 = vpop.permute.xlu0 %1212 }
 0x186   : > { %v1082_v17 = vmul.f32 %v3546_v2, %v1078_v45  ;;  %v1088_v43 = vmul.f32 %v3547_v62, %v1078_v45  ;;  %v3548_v24 = vstv %s2925_s23  ;;  %v1077_v31 = vadd.f32 %v1072_v23, %v1063_v47 }
 0x187   : > { %v1094_v28 = vmul.f32 %v3548_v24, %v1078_v45  ;;  %v1205_v42 = vadd.f32 %v3549_v51, %v1199_v12  ;;  %v3550_v27 = vstv %s2935_s29  ;;  %v3551_v49 = vstv %s2937_s27  ;;  %v1229_v51 = vpop.permute.xlu1 %1228 }
 0x188   : > { %v1100_v63 = vmul.f32 %v3550_v27, %v1078_v45  ;;  %v1106_v3 = vmul.f32 %v3551_v49, %v1078_v45  ;;  %v1204_v11 = vadd.f32 %v3552_v36, %v1198_v53  ;;  %v1353_v39 = vadd.f32 %v3043_v18, %v1347_v21 }
 0x189   : > { %v3553_v23 = vstv %s2948_s30  ;;  %v3554_v2 = vstv %s2950_s7  ;;  %v3555_v62 = vstv %s2966_s14  ;;  %v1352_v29 = vadd.f32 %v3046_v19, %v1346_v1  ;;  %v1227_v21 = vpop.permute.xlu0 %1226 }
 0x18a   : > { %v1112_v47 = vmul.f32 %v3553_v23, %v1078_v45  ;;  %v1118_v12 = vmul.f32 %v3554_v2, %v1078_v45  ;;  %v1124_v24 = vmul.f32 %v3555_v62, %v1078_v45  ;;  %v1084_v27 = vadd.f32 %v1082_v17, %v3111_v20 }
 0x18b   : > { %v1090_v49 = vadd.f32 %v1088_v43, %v3114_v59  ;;  %v1096_v53 = vadd.f32 %v1094_v28, %v3117_v50  ;;  %v3556_v36 = vstv %s2918_s20  ;;  %v3557_v23 = vstv %s2920_s22 }
 0x18c   : > { %v1081_v18 = vmul.f32 %v3556_v36, %v1077_v31  ;;  %v1087_v58 = vmul.f32 %v3557_v23, %v1077_v31  ;;  %v3558_v37 = vstv %s2925_s23  ;;  %v3559_v56 = vstv %s2935_s29  ;;  %s227_s23 = sand.u32 1, %s3569_s13  }
 0x18d   : > { %v1093_v2 = vmul.f32 %v3558_v37, %v1077_v31  ;;  %v1099_v45 = vmul.f32 %v3559_v56, %v1077_v31  ;;  %v3560_v62 = vstv %s2937_s27  ;;  %v1102_v19 = vadd.f32 %v1100_v63, %v3120_v15  ;;  %v1363_v63 = vpop.permute.xlu1 %1362  ;;  %s1603_s29 = sshll.u32 %s227_s23, 7  ;;  %s3410_s16 = scalar_lea.sflag [#allocation3], %s227_s23 }
 0x18e   : > { %v1105_v16 = vmul.f32 %v3560_v62, %v1077_v31  ;;  %v1108_v20 = vadd.f32 %v1106_v3, %v3123_v6  ;;  %v3561_v1 = vstv %s2948_s30  ;;  %v1219_v59 = vadd.f32 %v1215_v57, %v1205_v42  ;;  %v1361_v57 = vpop.permute.xlu0 %1360  ;;  %s3333_s27 = scalar_lea.vmem [#allocation8], %s1603_s29  ;;  %s3580_s30 = sld [smem:[#allocation16_spill]] }
 0x18f   : > { %v1111_v17 = vmul.f32 %v3561_v1, %v1077_v31  ;;  %v1114_v50 = vadd.f32 %v1112_v47, %v3126_v52  ;;  %v1120_v43 = vadd.f32 %v1118_v12, %v3129_v14  ;;  %v3562_v28 = vstv %s2950_s7 }
 0x190   : > { %v1117_v36 = vmul.f32 %v3562_v28, %v1077_v31  ;;  %v3563_v37 = vstv %s2966_s14  ;;  %v1126_v56 = vadd.f32 %v1124_v24, %v3132_v40  ;;  %v1083_v62 = vadd.f32 %v1081_v18, %v3163_v7  ;;  %s1500_s14 = sshll.u32 %s3333_s27, 4  ;;  %s3382_s14 = int_to_ptr.vmem [resolvable:$true] %s1500_s14 }
 0x191   : > { %v1123_v23 = vmul.f32 %v3563_v37, %v1077_v31  ;;  %v1218_v15 = vadd.f32 %v1213_v33, %v1204_v11  ;;  %v1233_v6 = vadd.f32 %v1229_v51, %v1219_v59  ;;  %v1089_v52 = vadd.f32 %v1087_v58, %v3166_v48  ;;  %s1910_s18 = scalar_lea.vmem %s3382_s14, 2048 }
 0x192   : > { %v1095_v14 = vadd.f32 %v1093_v2, %v3169_v44  ;;  %v1101_v42 = vadd.f32 %v1099_v45, %v3172_v4  ;;  %v1107_v31 = vadd.f32 %v1105_v16, %v3177_v26  ;;  %v1113_v40 = vadd.f32 %v1111_v17, %v3180_v60  ;;  %p1911_p12 = scmp.ne.s32.totalorder %s3382_s14, %s1910_s18 }
 0x193   : > { %v1237_v7 = vmul.f32 %v1235_v38, %v1233_v6  ;;  %v1243_v33 = vmul.f32 %v1241_v30, %v1233_v6  ;;  %v1232_v3 = vadd.f32 %v1227_v21, %v1218_v15  ;;  %v1119_v48 = vadd.f32 %v1117_v36, %v3183_v22  ;;  %v1377_v36 = vpop.permute.xlu1 %1376 }
 0x194   : > { %v1125_v44 = vadd.f32 %v1123_v23, %v3186_v10  ;;  %v1367_v4 = vadd.f32 %v1363_v63, %v1353_v39  ;;  %v1366_v26 = vadd.f32 %v1361_v57, %v1352_v29  ;;  %v1249_v60 = vmul.f32 %v1247_v8, %v1233_v6  ;;  %s1783_s7 = sshll.u32 %s3580_s30, 11  ;;  %p1912_p3 = pnand %p1911_p12, %p3588_p2 }
 0x195   : > { %v3564_v16 = vstv %s2995_s21  ;;  %v3565_v11 = vstv %s2997_s0  ;;  %v1267_v12 = vmul.f32 %v1265_v0, %v1233_v6  ;;  %v1239_v24 = vadd.f32 %v1237_v7, %v1084_v27  ;;  %s3380_s17 = scalar_lea.hbm %s3582_s25, %s1783_s7  ;;  %s1987_s21 = smov [#allocation8]  }
 0x196   : > { %v1255_v58 = vmul.f32 %v3564_v16, %v1233_v6  ;;  %v1261_v47 = vmul.f32 %v3565_v11, %v1233_v6  ;;  %v1245_v51 = vadd.f32 %v1243_v33, %v1090_v49  ;;  %v3566_v18 = vstv %s3007_s3  ;;  %p1913_p4 = pneg %p1912_p3  ;;  %s1914_s0 = sshll.u32 %s1987_s21, 4  ;;  %s1915_s0 = int_to_ptr.vmem [resolvable:$false] %s1914_s0 }
 0x197   : > { %v1273_v22 = vmul.f32 %v3566_v18, %v1233_v6  ;;  %v1279_v21 = vmul.f32 %v1277_v9, %v1233_v6  ;;  %v1236_v10 = vmul.f32 %v1235_v38, %v1232_v3  ;;  %v1242_v39 = vmul.f32 %v1241_v30, %v1232_v3  ;;  %s1916_s2 = scalar_lea.vmem %s1915_s0, 4096  ;;  %p1917_p9 = scmp.lt.s32.totalorder %s3382_s14, %s1915_s0 }
 0x198   : > { %v1248_v29 = vmul.f32 %v1247_v8, %v1232_v3  ;;  %v3567_v2 = vmov %v3564_v16  ;;  %v3568_v1 = vmov %v3565_v11  ;;  %v1266_v59 = vmul.f32 %v1265_v0, %v1232_v3  ;;  %v1375_v8 = vpop.permute.xlu0 %1374  ;;  %p1918_p7 = scmp.lt.s32.totalorder %s1916_s2, %s1910_s18 }
 0x199   : > { %v1254_v45 = vmul.f32 %v3567_v2, %v1232_v3  ;;  %v1260_v17 = vmul.f32 %v3568_v1, %v1232_v3  ;;  %v3570_v28 = vmov %v3566_v18  ;;  %v1278_v49 = vmul.f32 %v1277_v9, %v1232_v3 }
 0x19a   : > { %v1272_v27 = vmul.f32 %v3570_v28, %v1232_v3  ;;  %v1251_v37 = vadd.f32 %v1249_v60, %v1096_v53  ;;  %v1257_v23 = vadd.f32 %v1255_v58, %v1102_v19  ;;  %v1263_v38 = vadd.f32 %v1261_v47, %v1108_v20  ;;  %p1919_p5 = por %p1918_p7, %p1917_p9 }
 0x19b   : > { %v1269_v30 = vadd.f32 %v1267_v12, %v1114_v50  ;;  %v1275_v15 = vadd.f32 %v1273_v22, %v1120_v43  ;;  %v1281_v6 = vadd.f32 %v1279_v21, %v1126_v56  ;;  %v1238_v63 = vadd.f32 %v1236_v10, %v1083_v62 }
 0x19c   : > { %v1244_v0 = vadd.f32 %v1242_v39, %v1089_v52  ;;  %v1250_v9 = vadd.f32 %v1248_v29, %v1095_v14  ;;  %v1256_v53 = vadd.f32 %v1254_v45, %v1101_v42  ;;  %v1262_v19 = vadd.f32 %v1260_v17, %v1107_v31  ;;  %p1920_p6 = pnand %p1919_p5, %p1913_p4 }
 0x19d   : > { %v1381_v20 = vadd.f32 %v1377_v36, %v1367_v4  ;;  %v1268_v57 = vadd.f32 %v1266_v59, %v1113_v40  ;;  %v1274_v50 = vadd.f32 %v1272_v27, %v1119_v48  ;;  %v1280_v7 = vadd.f32 %v1278_v49, %v1125_v44 }
 0x19e   : > { %v1380_v33 = vadd.f32 %v1375_v8, %v1366_v26  ;;  %v3575_v18 = vstv %s3158_s11  ;;  %v3577_v21 = vstv %s3174_s6  ;;  %v3578_v39 = vstv %s3188_s9 }
 0x19f   : > { %v1385_v43 = vmul.f32 %v1383_v34, %v1381_v20  ;;  %v1391_v56 = vmul.f32 %v1389_v32, %v1381_v20  ;;  %v1397_v62 = vmul.f32 %v1395_v41, %v1381_v20  ;;  %v1403_v52 = vmul.f32 %v1401_v13, %v1381_v20 }
 0x1a0   : > { %v1409_v14 = vmul.f32 %v1407_v25, %v1381_v20  ;;  %v1415_v42 = vmul.f32 %v1413_v55, %v1381_v20  ;;  %v1421_v31 = vmul.f32 %v1419_v46, %v1381_v20  ;;  %v1427_v40 = vmul.f32 %v1425_v35, %v1381_v20 }
 0x1a1   : > { %v1387_v3 = vadd.f32 %v1385_v43, %v1239_v24  ;;  %v1393_v48 = vadd.f32 %v1391_v56, %v1245_v51  ;;  %v1399_v44 = vadd.f32 %v1397_v62, %v1251_v37  ;;  %v1405_v4 = vadd.f32 %v1403_v52, %v1257_v23 }
 0x1a2   : > { %v1411_v26 = vadd.f32 %v1409_v14, %v1263_v38  ;;  %v1417_v60 = vadd.f32 %v1415_v42, %v1269_v30  ;;  %v1423_v16 = vadd.f32 %v1421_v31, %v1275_v15  ;;  %v1429_v58 = vadd.f32 %v1427_v40, %v1281_v6 }
 0x1a3   : > { %v1433_v11 = vadd.f32 %v1431_v61, %v1387_v3  ;;  %v1440_v47 = vadd.f32 %v1438_v54, %v1393_v48  ;;  %v1447_v12 = vadd.f32 %v1445_v5, %v1399_v44  ;;  %v1454_v22 = vadd.f32 %v3575_v18, %v1405_v4 }
 0x1a4   : > { %v3576_v24 = vstv %s3160_s5  ;;  %v1468_v10 = vadd.f32 %v3577_v21, %v1417_v60  ;;  %v1475_v29 = vadd.f32 %v3578_v39, %v1423_v16  ;;  %v3579_v2 = vstv %s3190_s12 }
 0x1a5   : > { %v1461_v51 = vadd.f32 %v3576_v24, %v1411_v26  ;;  %v1482_v45 = vadd.f32 %v3579_v2, %v1429_v58  ;;  %1436 = vst.msk [vmem:[%s3333_s27 + $0x8] sm:$0xff] %vm1434_vm0, %v1433_v11  ;;  %1759 = vst.msk [vmem:[%s3333_s27 + $0x18] sm:$0xff] %vm1434_vm0, %v1440_v47  ;;  %v1384_v1 = vmul.f32 %v1383_v34, %v1380_v33  ;;  %v3581_v8 = vmov %v3575_v18 }
 0x1a6   : > { %1762 = vst.msk [vmem:[%s3333_s27 + $0x28] sm:$0xff] %vm1434_vm0, %v1447_v12  ;;  %1765 = vst.msk [vmem:[%s3333_s27 + $0x38] sm:$0xff] %vm1434_vm0, %v1454_v22  ;;  %v1390_v17 = vmul.f32 %v1389_v32, %v1380_v33  ;;  %v1396_v59 = vmul.f32 %v1395_v41, %v1380_v33  ;;  %v1402_v28 = vmul.f32 %v1401_v13, %v1380_v33  ;;  %v3583_v6 = vmov %v3576_v24 }
 0x1a7   : > { %1768 = vst.msk [vmem:[%s3333_s27 + $0x48] sm:$0xff] %vm1434_vm0, %v1461_v51  ;;  %1771 = vst.msk [vmem:[%s3333_s27 + $0x58] sm:$0xff] %vm1434_vm0, %v1468_v10  ;;  %v1408_v27 = vmul.f32 %v1407_v25, %v1380_v33  ;;  %v1414_v34 = vmul.f32 %v1413_v55, %v1380_v33  ;;  %v1420_v32 = vmul.f32 %v1419_v46, %v1380_v33 }
 0x1a8   : > { %1774 = vst.msk [vmem:[%s3333_s27 + $0x68] sm:$0xff] %vm1434_vm0, %v1475_v29  ;;  %1777 = vst.msk [vmem:[%s3333_s27 + $0x78] sm:$0xff] %vm1434_vm0, %v1482_v45  ;;  %v1426_v41 = vmul.f32 %v1425_v35, %v1380_v33  ;;  %v1386_v13 = vadd.f32 %v1384_v1, %v1238_v63  ;;  %v1392_v49 = vadd.f32 %v1390_v17, %v1244_v0  ;;  %v3585_v63 = vmov %v3577_v21 }
 0x1a9   : > { %v1398_v36 = vadd.f32 %v1396_v59, %v1250_v9  ;;  %v1404_v37 = vadd.f32 %v1402_v28, %v1256_v53  ;;  %v1410_v25 = vadd.f32 %v1408_v27, %v1262_v19  ;;  %v1416_v55 = vadd.f32 %v1414_v34, %v1268_v57 }
 0x1aa   : > { %v1422_v23 = vadd.f32 %v1420_v32, %v1274_v50  ;;  %v1428_v46 = vadd.f32 %v1426_v41, %v1280_v7  ;;  %v1432_v35 = vadd.f32 %v1431_v61, %v1386_v13  ;;  %v1439_v38 = vadd.f32 %v1438_v54, %v1392_v49 }
 0x1ab   : > { %v1446_v30 = vadd.f32 %v1445_v5, %v1398_v36  ;;  %v1453_v15 = vadd.f32 %v3581_v8, %v1404_v37  ;;  %v1460_v61 = vadd.f32 %v3583_v6, %v1410_v25  ;;  %v1467_v54 = vadd.f32 %v3585_v63, %v1416_v55 }
 0x1ac   : > { %v3586_v0 = vmov %v3578_v39  ;;  %v3587_v5 = vmov %v3579_v2  ;;  %1435 = vst.msk [vmem:[%s3333_s27] sm:$0xff] %vm1434_vm0, %v1432_v35  ;;  %1758 = vst.msk [vmem:[%s3333_s27 + $0x10] sm:$0xff] %vm1434_vm0, %v1439_v38 }
 0x1ad   : > { %v1474_v9 = vadd.f32 %v3586_v0, %v1422_v23  ;;  %v1481_v53 = vadd.f32 %v3587_v5, %v1428_v46  ;;  %1761 = vst.msk [vmem:[%s3333_s27 + $0x20] sm:$0xff] %vm1434_vm0, %v1446_v30  ;;  %1764 = vst.msk [vmem:[%s3333_s27 + $0x30] sm:$0xff] %vm1434_vm0, %v1453_v15 }
 0x1ae   : > { %1767 = vst.msk [vmem:[%s3333_s27 + $0x40] sm:$0xff] %vm1434_vm0, %v1460_v61  ;;  %1770 = vst.msk [vmem:[%s3333_s27 + $0x50] sm:$0xff] %vm1434_vm0, %v1467_v54 }
 0x1af   : > { %1773 = vst.msk [vmem:[%s3333_s27 + $0x60] sm:$0xff] %vm1434_vm0, %v1474_v9  ;;  %1776 = vst.msk [vmem:[%s3333_s27 + $0x70] sm:$0xff] %vm1434_vm0, %v1481_v53 }
 0x1b0   : > { %1923 = shalt.err (!%p1920_p6)
}
 0x1b1   : > { %s1924_s3 = scalar_lea.hbm %s3380_s17, 2048  ;;  %s1928_s10 = scalar_lea.hbm %s3582_s25, 4096 }
 0x1b2   : > { %p1925_p10 = scmp.ne.s32.totalorder %s3380_s17, %s1924_s3  ;;  %p1929_p11 = scmp.lt.u32.totalorder %s3380_s17, %s3582_s25 }
 0x1b3   : > { %p1930_p13 = scmp.lt.u32.totalorder %s1928_s10, %s1924_s3  ;;  %p1932_p12 = scmp.lt.u32.totalorder %s1924_s3, %s3380_s17 }
 0x1b4   : > { %p1926_p8 = pnand %p1925_p10, %p3588_p2 }
 0x1b5   : > { %p1931_p1 = por %p1930_p13, %p1929_p11 }
 0x1b6   : > { %p1927_p0 = pneg %p1926_p8 }
 0x1b7   : > { %p1933_p3 = por %p1932_p12, %p1931_p1 }
 0x1b9   : > { %p1934_p4 = pnand %p1933_p3, %p1927_p0 }
 0x1bb   : > { %1937 = shalt.err (!%p1934_p4)
}
 0x1bc   : > { %s1988_s5 = smov 128   ;;  %s1989_s6 = smov 8  }
 0x1bd   : > { %1797 = dma.vmem_to_hbm [thread:$0]  (%p3588_p2), %s3382_s14, 2048, %s3380_s17, %s3410_s16, %s1988_s5, %s1988_s5, %s1989_s6  }
 0x1be PF: > { %s3589_s9 = sld [smem:[#allocation15_spill]]  ;;  %s3590_s12 = sld [smem:[#allocation12_spill]] }
 0x1bf   : > { %s3591_s13 = sld [smem:[#allocation20_spill]] }
 0x1c4   : > { %p1819_p9 = scmp.ge.s32.totalorder %s3589_s9, 2  ;;  %s1515_s26 = sand.u32 1, %s3590_s12  }
 0x1c5   : > { %p3592_p7 = scmp.ne.s32.totalorder %s3591_s13, 0  ;;  %s1516_s1 = scalar_lea.sflag [#allocation3], %s1515_s26 }
 0x1c7   : > { %p1810_p5 = pnand %p1819_p9, %p3592_p7 }
 0x1c9   : > { %1963 = dma.done.wait (!%p1810_p5), %s1516_s1, 2048  }
 0x1ca   : > { %1965 = vsyncadd (!%p1810_p5), %s1516_s1, 4294965248  ;;  %s3593_s18 = sld [smem:[#allocation17_spill]]  ;;  %s3594_s15 = sld [smem:[#allocation13_spill]] }
 0x1cb   : > { %s3595_s16 = sld [smem:[#allocation14_spill]]  ;;  %s3596_s17 = sld [smem:[#allocation18_spill]] }
 0x1d0   : > { %p16_p6 = scmp.ge.s32.totalorder %s3593_s18, 4  }
 0x1d2   :  { %18 = sbr.rel (!%p16_p6) target bundleno = 11 (0xb), region = 94 }
 0x1d9   :  { %1521 = vsyncpa [#allocation3], 1 }
 0x1da   :  { %1523 = vsyncpa [#allocation3 + $0x1], 1 }
 0x1db   :  { %1524 = vsyncpa [#allocation4], 1 }
 0x1dc   :  { %1526 = vsyncpa [#allocation4 + $0x1], 1 }
 0x1dd   :  { %1527 = vsyncpa [#allocation6], 1 }

</bundles_post_ra>
